<compile_context>
chip_gen: v7x
topology: tpu7x:2x2x1
jax: 0.10.0
libtpu: 0.0.40
codegen_flags: <defaults>
</compile_context>

<pallas_src>
import jax
import jax.numpy as jnp
from jax.experimental import pallas as pl
from jax.experimental.pallas import tpu as pltpu


def bert_classifier_kernel(bert_ref, nrc_ref, avd_ref,
                           w_emo_ref, b_emo_ref, w_vad_ref, b_vad_ref,
                           w_fc_ref, b_fc_ref, w_lab_ref, b_lab_ref,
                           out_ref):
    bt, L, D = bert_ref.shape

    # ----- activations for this batch tile (upcast to f32 for all math) -----
    bert = bert_ref[...].astype(jnp.float32)                 # (bt, L, D)
    cls = bert[:, 0:1, :]                                    # (bt, 1, D)  == bert_out[:, 0, :]

    # nrc = relu(emo_freq(nrc_feats)) batched over the whole tile:
    #   (bt*L, NRC) @ (NRC, D)
    nrc_in = nrc_ref[...].astype(jnp.float32).reshape(bt * L, -1)
    nrc_p = jnp.maximum(
        jnp.dot(nrc_in, w_emo_ref[...], preferred_element_type=jnp.float32)
        + b_emo_ref[...], 0.0).reshape(bt, L, D)

    # a/v/d = relu(vad_linear(.)) on the stacked [a; v; d] rows:
    #   (bt*3, MAX_LEN) @ (MAX_LEN, D)
    avd_in = avd_ref[...].astype(jnp.float32).reshape(bt * 3, -1)
    avd_p = jnp.maximum(
        jnp.dot(avd_in, w_vad_ref[...], preferred_element_type=jnp.float32)
        + b_vad_ref[...], 0.0).reshape(bt, 3, D)

    # ----- attention_net over combine = [bert_out; nrc; a; v; d] (rows) -----
    # scores computed piecewise so the concat never materializes in VMEM
    s_bert = jnp.sum(bert * cls, axis=-1, keepdims=True)     # (bt, L, 1)
    s_nrc = jnp.sum(nrc_p * cls, axis=-1, keepdims=True)     # (bt, L, 1)
    s_avd = jnp.sum(avd_p * cls, axis=-1, keepdims=True)     # (bt, 3, 1)

    m = jnp.maximum(
        jnp.maximum(jnp.max(s_bert, axis=1, keepdims=True),
                    jnp.max(s_nrc, axis=1, keepdims=True)),
        jnp.max(s_avd, axis=1, keepdims=True))               # (bt, 1, 1)

    e_bert = jnp.exp(s_bert - m)
    e_nrc = jnp.exp(s_nrc - m)
    e_avd = jnp.exp(s_avd - m)
    denom = (jnp.sum(e_bert, axis=1, keepdims=True)
             + jnp.sum(e_nrc, axis=1, keepdims=True)
             + jnp.sum(e_avd, axis=1, keepdims=True))        # (bt, 1, 1)

    w_bert = e_bert / denom
    w_nrc = e_nrc / denom
    w_avd = e_avd / denom

    # new_hidden = combine^T @ softmax(scores)  -> (bt, D)
    nh = (jnp.sum(bert * w_bert, axis=1)
          + jnp.sum(nrc_p * w_nrc, axis=1)
          + jnp.sum(avd_p * w_avd, axis=1))

    # fc + relu, dropout (identity at inference), label head
    h = jnp.maximum(
        jnp.dot(nh, w_fc_ref[...], preferred_element_type=jnp.float32)
        + b_fc_ref[...], 0.0)
    # TODO(synk): nn.Dropout(0.3) is treated as identity (inference-mode semantics).
    out_ref[...] = (jnp.dot(h, w_lab_ref[...], preferred_element_type=jnp.float32)
                    + b_lab_ref[...]).astype(out_ref.dtype)


def bert_classifier_forward(bert_out, nrc_feats, a, v, d, params,
                            *, b_tile=8, in_dtype=None):
    """bert_out: (B,L,D)  nrc_feats: (B,L,NRC)  a/v/d: (B,MAX_LEN)."""
    B, L, D = bert_out.shape
    NRC = nrc_feats.shape[-1]
    MAX_LEN = a.shape[-1]
    H = params["w_fc"].shape[1]
    D_OUT = params["w_lab"].shape[1]
    LANE = 128

    # batch tile: multiple of 8 sublanes so every block is layout-friendly
    b_tile = max(8, ((int(b_tile) + 7) // 8) * 8)
    n_blk = pl.cdiv(B, b_tile)
    b_pad = n_blk * b_tile

    # lane-dense output: pad the label head to a multiple of 128 lanes
    d_out_pad = ((D_OUT + LANE - 1) // LANE) * LANE
    w_lab = jnp.pad(params["w_lab"], ((0, 0), (0, d_out_pad - D_OUT)))
    b_lab = jnp.pad(params["b_lab"], ((0, 0), (0, d_out_pad - D_OUT)))

    # single stacked [a; v; d] input -> one DMA + one vad matmul per grid step
    avd = jnp.stack([a, v, d], axis=1).astype(jnp.float32)   # (B, 3, MAX_LEN)

    # optional bf16 storage for the big activations (halves HBM traffic)
    if in_dtype is not None:
        bert_out = bert_out.astype(in_dtype)
        nrc_feats = nrc_feats.astype(in_dtype)

    if b_pad != B:
        bert_out = jnp.pad(bert_out, ((0, b_pad - B), (0, 0), (0, 0)))
        nrc_feats = jnp.pad(nrc_feats, ((0, b_pad - B), (0, 0), (0, 0)))
        avd = jnp.pad(avd, ((0, b_pad - B), (0, 0), (0, 0)))

    def const_spec(shape):
        return pl.BlockSpec(shape, lambda i: (0,) * len(shape))

    out = pl.pallas_call(
        bert_classifier_kernel,
        out_shape=jax.ShapeDtypeStruct((b_pad, d_out_pad), jnp.float32),
        grid=(n_blk,),
        in_specs=[
            pl.BlockSpec((b_tile, L, D), lambda i: (i, 0, 0)),        # bert_out tile
            pl.BlockSpec((b_tile, L, NRC), lambda i: (i, 0, 0)),      # nrc_feats tile
            pl.BlockSpec((b_tile, 3, MAX_LEN), lambda i: (i, 0, 0)),  # stacked a/v/d
            const_spec((NRC, D)),        # w_emo
            const_spec((1, D)),          # b_emo
            const_spec((MAX_LEN, D)),    # w_vad
            const_spec((1, D)),          # b_vad
            const_spec((D, H)),          # w_fc
            const_spec((1, H)),          # b_fc
            const_spec((H, d_out_pad)),  # w_lab (lane padded)
            const_spec((1, d_out_pad)),  # b_lab (lane padded)
        ],
        out_specs=pl.BlockSpec((b_tile, d_out_pad), lambda i: (i, 0)),
        compiler_params=pltpu.CompilerParams(
            dimension_semantics=("parallel",)),   # independent batch tiles -> megacore
    )(bert_out, nrc_feats, avd,
      params["w_emo"], params["b_emo"],
      params["w_vad"], params["b_vad"],
      params["w_fc"], params["b_fc"],
      w_lab, b_lab)

    return out[:B, :D_OUT]


def reference_forward(bert_out, nrc_feats, a, v, d, p):
    # Pure-JAX reference of the post-BERT head (f32-precision matmuls).
    with jax.default_matmul_precision("float32"):
        cls = bert_out[:, 0, :]
        nrc = jax.nn.relu(nrc_feats @ p["w_emo"] + p["b_emo"])
        a_p = jax.nn.relu(a @ p["w_vad"] + p["b_vad"])
        v_p = jax.nn.relu(v @ p["w_vad"] + p["b_vad"])
        d_p = jax.nn.relu(d @ p["w_vad"] + p["b_vad"])
        combine = jnp.concatenate(
            [bert_out, nrc, a_p[:, None, :], v_p[:, None, :], d_p[:, None, :]], axis=1)
        attn = jnp.einsum("bnd,bd->bn", combine, cls)
        soft = jax.nn.softmax(attn, axis=1)
        nh = jnp.einsum("bnd,bn->bd", combine, soft)
        h = jax.nn.relu(nh @ p["w_fc"] + p["b_fc"])
        return h @ p["w_lab"] + p["b_lab"]


if __name__ == "__main__":
    # Small shapes consistent with the module's forward (scaled down from
    # D_in=768, H=384, MAX_LEN=126, num_labels=11, NRC feat dim=10).
    B, L, D, H, MAX_LEN, NRC, D_OUT = 12, 8, 128, 128, 16, 10, 11

    key = jax.random.PRNGKey(0)
    ks = jax.random.split(key, 13)

    # TODO(synk): the pretrained BERT backbone (BertForSequenceClassification) is
    # not re-implemented; its last hidden state is supplied directly as bert_out.
    bert_out = jax.random.normal(ks[0], (B, L, D), jnp.float32)
    nrc_feats = jax.random.uniform(ks[1], (B, L, NRC), jnp.float32)
    a = jax.random.normal(ks[2], (B, MAX_LEN), jnp.float32)
    v = jax.random.normal(ks[3], (B, MAX_LEN), jnp.float32)
    d = jax.random.normal(ks[4], (B, MAX_LEN), jnp.float32)

    s = 0.02
    params = {
        "w_emo": jax.random.normal(ks[5], (NRC, D), jnp.float32) * s,
        "b_emo": jax.random.normal(ks[6], (1, D), jnp.float32) * s,
        "w_vad": jax.random.normal(ks[7], (MAX_LEN, D), jnp.float32) * s,
        "b_vad": jax.random.normal(ks[8], (1, D), jnp.float32) * s,
        "w_fc": jax.random.normal(ks[9], (D, H), jnp.float32) * s,
        "b_fc": jax.random.normal(ks[10], (1, H), jnp.float32) * s,
        "w_lab": jax.random.normal(ks[11], (H, D_OUT), jnp.float32) * s,
        "b_lab": jax.random.normal(ks[12], (1, D_OUT), jnp.float32) * s,
    }

    # --- f32 path: strict check against the JAX reference ---
    logits = bert_classifier_forward(bert_out, nrc_feats, a, v, d, params, b_tile=8)
    jax.block_until_ready(logits)
    ref = reference_forward(bert_out, nrc_feats, a, v, d, params)
    assert logits.shape == (B, D_OUT)
    assert jnp.allclose(logits, ref, atol=1e-3, rtol=1e-3), "f32 mismatch vs JAX reference"

    # --- bf16 activation path (halves HBM traffic on the dominant bert_out read);
    #     compare against the reference evaluated on bf16-rounded activations ---
    logits_bf16 = bert_classifier_forward(bert_out, nrc_feats, a, v, d, params,
                                          b_tile=8, in_dtype=jnp.bfloat16)
    jax.block_until_ready(logits_bf16)
    ref_bf16 = reference_forward(
        bert_out.astype(jnp.bfloat16).astype(jnp.float32),
        nrc_feats.astype(jnp.bfloat16).astype(jnp.float32),
        a, v, d, params)
    assert jnp.allclose(logits_bf16, ref_bf16, atol=2e-3, rtol=2e-3), "bf16 mismatch vs reference"

    print("KERNEL_OK")
</pallas_src>

<mosaic_0001>
module attributes {stable_mosaic.version = 11 : i64} {
  func.func @bert_classifier_kernel(%arg0: i32, %arg1: memref<8x8x128xf32, #tpu.memory_space<vmem>>, %arg2: memref<8x8x10xf32, #tpu.memory_space<vmem>>, %arg3: memref<8x3x16xf32, #tpu.memory_space<vmem>>, %arg4: memref<10x128xf32, #tpu.memory_space<vmem>>, %arg5: memref<1x128xf32, #tpu.memory_space<vmem>>, %arg6: memref<16x128xf32, #tpu.memory_space<vmem>>, %arg7: memref<1x128xf32, #tpu.memory_space<vmem>>, %arg8: memref<128x128xf32, #tpu.memory_space<vmem>>, %arg9: memref<1x128xf32, #tpu.memory_space<vmem>>, %arg10: memref<128x128xf32, #tpu.memory_space<vmem>>, %arg11: memref<1x128xf32, #tpu.memory_space<vmem>>, %arg12: memref<8x128xf32, #tpu.memory_space<vmem>>) attributes {dimension_semantics = [#tpu.dimension_semantics<parallel>], iteration_bounds = array<i64: 2>, scalar_prefetch = 0 : i64, scratch_operands = 0 : i64, tpu.core_type = #tpu.core_type<tc>, window_params = [{transform_indices = @transform_0, window_bounds = array<i64: 8, 8, 128>}, {transform_indices = @transform_1, window_bounds = array<i64: 8, 8, 10>}, {transform_indices = @transform_2, window_bounds = array<i64: 8, 3, 16>}, {pipeline_mode = #tpu.pipeline_mode<synchronous>, transform_indices = @transform_3, window_bounds = array<i64: 10, 128>}, {pipeline_mode = #tpu.pipeline_mode<synchronous>, transform_indices = @transform_4, window_bounds = array<i64: 1, 128>}, {pipeline_mode = #tpu.pipeline_mode<synchronous>, transform_indices = @transform_5, window_bounds = array<i64: 16, 128>}, {pipeline_mode = #tpu.pipeline_mode<synchronous>, transform_indices = @transform_6, window_bounds = array<i64: 1, 128>}, {pipeline_mode = #tpu.pipeline_mode<synchronous>, transform_indices = @transform_7, window_bounds = array<i64: 128, 128>}, {pipeline_mode = #tpu.pipeline_mode<synchronous>, transform_indices = @transform_8, window_bounds = array<i64: 1, 128>}, {pipeline_mode = #tpu.pipeline_mode<synchronous>, transform_indices = @transform_9, window_bounds = array<i64: 128, 128>}, {pipeline_mode = #tpu.pipeline_mode<synchronous>, transform_indices = @transform_10, window_bounds = array<i64: 1, 128>}, {transform_indices = @transform_11, window_bounds = array<i64: 8, 128>}]} {
    %c0 = arith.constant 0 : index
    %c0_0 = arith.constant 0 : index
    %c0_1 = arith.constant 0 : index
    %0 = vector.load %arg1[%c0, %c0_0, %c0_1] : memref<8x8x128xf32, #tpu.memory_space<vmem>>, vector<8x8x128xf32>
    %1 = vector.extract_strided_slice %0 {offsets = [0, 0, 0], sizes = [8, 1, 128], strides = [1, 1, 1]} : vector<8x8x128xf32> to vector<8x1x128xf32>
    %c0_2 = arith.constant 0 : index
    %c0_3 = arith.constant 0 : index
    %c0_4 = arith.constant 0 : index
    %2 = vector.load %arg2[%c0_2, %c0_3, %c0_4] : memref<8x8x10xf32, #tpu.memory_space<vmem>>, vector<8x8x10xf32>
    %3 = vector.shape_cast %2 : vector<8x8x10xf32> to vector<64x10xf32>
    %c0_5 = arith.constant 0 : index
    %c0_6 = arith.constant 0 : index
    %4 = vector.load %arg4[%c0_5, %c0_6] : memref<10x128xf32, #tpu.memory_space<vmem>>, vector<10x128xf32>
    %cst = arith.constant dense<0.000000e+00> : vector<64x128xf32>
    %5 = tpu.matmul %3, %4, %cst {dimension_numbers = #tpu.dot_dimension_numbers<[1], [0], [0], [1], [0, 0, 1, 1], [], []>} : vector<64x10xf32>, vector<10x128xf32>, vector<64x128xf32> -> vector<64x128xf32>
    %c0_7 = arith.constant 0 : index
    %c0_8 = arith.constant 0 : index
    %6 = vector.load %arg5[%c0_7, %c0_8] : memref<1x128xf32, #tpu.memory_space<vmem>>, vector<1x128xf32>
    %7 = vector.broadcast %6 : vector<1x128xf32> to vector<64x128xf32>
    %8 = arith.addf %5, %7 : vector<64x128xf32>
    %cst_9 = arith.constant 0.000000e+00 : f32
    %9 = vector.broadcast %cst_9 : f32 to vector<64x128xf32>
    %10 = arith.maximumf %8, %9 : vector<64x128xf32>
    %11 = vector.shape_cast %10 : vector<64x128xf32> to vector<8x8x128xf32>
    %c0_10 = arith.constant 0 : index
    %c0_11 = arith.constant 0 : index
    %c0_12 = arith.constant 0 : index
    %12 = vector.load %arg3[%c0_10, %c0_11, %c0_12] : memref<8x3x16xf32, #tpu.memory_space<vmem>>, vector<8x3x16xf32>
    %13 = vector.shape_cast %12 : vector<8x3x16xf32> to vector<24x16xf32>
    %c0_13 = arith.constant 0 : index
    %c0_14 = arith.constant 0 : index
    %14 = vector.load %arg6[%c0_13, %c0_14] : memref<16x128xf32, #tpu.memory_space<vmem>>, vector<16x128xf32>
    %cst_15 = arith.constant dense<0.000000e+00> : vector<24x128xf32>
    %15 = tpu.matmul %13, %14, %cst_15 {dimension_numbers = #tpu.dot_dimension_numbers<[1], [0], [0], [1], [0, 0, 1, 1], [], []>} : vector<24x16xf32>, vector<16x128xf32>, vector<24x128xf32> -> vector<24x128xf32>
    %c0_16 = arith.constant 0 : index
    %c0_17 = arith.constant 0 : index
    %16 = vector.load %arg7[%c0_16, %c0_17] : memref<1x128xf32, #tpu.memory_space<vmem>>, vector<1x128xf32>
    %17 = vector.broadcast %16 : vector<1x128xf32> to vector<24x128xf32>
    %18 = arith.addf %15, %17 : vector<24x128xf32>
    %cst_18 = arith.constant 0.000000e+00 : f32
    %19 = vector.broadcast %cst_18 : f32 to vector<24x128xf32>
    %20 = arith.maximumf %18, %19 : vector<24x128xf32>
    %21 = vector.shape_cast %20 : vector<24x128xf32> to vector<8x3x128xf32>
    %22 = vector.broadcast %1 : vector<8x1x128xf32> to vector<8x8x128xf32>
    %23 = arith.mulf %0, %22 : vector<8x8x128xf32>
    %cst_19 = arith.constant dense<0.000000e+00> : vector<8x8xf32>
    %24 = vector.multi_reduction <add>, %23, %cst_19 [2] : vector<8x8x128xf32> to vector<8x8xf32>
    %25 = vector.shape_cast %24 : vector<8x8xf32> to vector<8x8x1xf32>
    %26 = vector.broadcast %1 : vector<8x1x128xf32> to vector<8x8x128xf32>
    %27 = arith.mulf %11, %26 : vector<8x8x128xf32>
    %cst_20 = arith.constant dense<0.000000e+00> : vector<8x8xf32>
    %28 = vector.multi_reduction <add>, %27, %cst_20 [2] : vector<8x8x128xf32> to vector<8x8xf32>
    %29 = vector.shape_cast %28 : vector<8x8xf32> to vector<8x8x1xf32>
    %30 = vector.broadcast %1 : vector<8x1x128xf32> to vector<8x3x128xf32>
    %31 = arith.mulf %21, %30 : vector<8x3x128xf32>
    %cst_21 = arith.constant dense<0.000000e+00> : vector<8x3xf32>
    %32 = vector.multi_reduction <add>, %31, %cst_21 [2] : vector<8x3x128xf32> to vector<8x3xf32>
    %33 = vector.shape_cast %32 : vector<8x3xf32> to vector<8x3x1xf32>
    %cst_22 = arith.constant dense<0xFF800000> : vector<8x1xf32>
    %34 = vector.multi_reduction <maximumf>, %25, %cst_22 [1] : vector<8x8x1xf32> to vector<8x1xf32>
    %35 = vector.shape_cast %34 : vector<8x1xf32> to vector<8x1x1xf32>
    %cst_23 = arith.constant dense<0xFF800000> : vector<8x1xf32>
    %36 = vector.multi_reduction <maximumf>, %29, %cst_23 [1] : vector<8x8x1xf32> to vector<8x1xf32>
    %37 = vector.shape_cast %36 : vector<8x1xf32> to vector<8x1x1xf32>
    %38 = arith.maximumf %35, %37 : vector<8x1x1xf32>
    %cst_24 = arith.constant dense<0xFF800000> : vector<8x1xf32>
    %39 = vector.multi_reduction <maximumf>, %33, %cst_24 [1] : vector<8x3x1xf32> to vector<8x1xf32>
    %40 = vector.shape_cast %39 : vector<8x1xf32> to vector<8x1x1xf32>
    %41 = arith.maximumf %38, %40 : vector<8x1x1xf32>
    %42 = vector.broadcast %41 : vector<8x1x1xf32> to vector<8x8x1xf32>
    %43 = arith.subf %25, %42 : vector<8x8x1xf32>
    %44 = math.exp %43 : vector<8x8x1xf32>
    %45 = vector.broadcast %41 : vector<8x1x1xf32> to vector<8x8x1xf32>
    %46 = arith.subf %29, %45 : vector<8x8x1xf32>
    %47 = math.exp %46 : vector<8x8x1xf32>
    %48 = vector.broadcast %41 : vector<8x1x1xf32> to vector<8x3x1xf32>
    %49 = arith.subf %33, %48 : vector<8x3x1xf32>
    %50 = math.exp %49 : vector<8x3x1xf32>
    %cst_25 = arith.constant dense<0.000000e+00> : vector<8x1xf32>
    %51 = vector.multi_reduction <add>, %44, %cst_25 [1] : vector<8x8x1xf32> to vector<8x1xf32>
    %52 = vector.shape_cast %51 : vector<8x1xf32> to vector<8x1x1xf32>
    %cst_26 = arith.constant dense<0.000000e+00> : vector<8x1xf32>
    %53 = vector.multi_reduction <add>, %47, %cst_26 [1] : vector<8x8x1xf32> to vector<8x1xf32>
    %54 = vector.shape_cast %53 : vector<8x1xf32> to vector<8x1x1xf32>
    %55 = arith.addf %52, %54 : vector<8x1x1xf32>
    %cst_27 = arith.constant dense<0.000000e+00> : vector<8x1xf32>
    %56 = vector.multi_reduction <add>, %50, %cst_27 [1] : vector<8x3x1xf32> to vector<8x1xf32>
    %57 = vector.shape_cast %56 : vector<8x1xf32> to vector<8x1x1xf32>
    %58 = arith.addf %55, %57 : vector<8x1x1xf32>
    %59 = vector.broadcast %58 : vector<8x1x1xf32> to vector<8x8x1xf32>
    %60 = arith.divf %44, %59 : vector<8x8x1xf32>
    %61 = vector.broadcast %58 : vector<8x1x1xf32> to vector<8x8x1xf32>
    %62 = arith.divf %47, %61 : vector<8x8x1xf32>
    %63 = vector.broadcast %58 : vector<8x1x1xf32> to vector<8x3x1xf32>
    %64 = arith.divf %50, %63 : vector<8x3x1xf32>
    %65 = vector.broadcast %60 : vector<8x8x1xf32> to vector<8x8x128xf32>
    %66 = arith.mulf %0, %65 : vector<8x8x128xf32>
    %cst_28 = arith.constant dense<0.000000e+00> : vector<8x128xf32>
    %67 = vector.multi_reduction <add>, %66, %cst_28 [1] : vector<8x8x128xf32> to vector<8x128xf32>
    %68 = vector.broadcast %62 : vector<8x8x1xf32> to vector<8x8x128xf32>
    %69 = arith.mulf %11, %68 : vector<8x8x128xf32>
    %cst_29 = arith.constant dense<0.000000e+00> : vector<8x128xf32>
    %70 = vector.multi_reduction <add>, %69, %cst_29 [1] : vector<8x8x128xf32> to vector<8x128xf32>
    %71 = arith.addf %67, %70 : vector<8x128xf32>
    %72 = vector.broadcast %64 : vector<8x3x1xf32> to vector<8x3x128xf32>
    %73 = arith.mulf %21, %72 : vector<8x3x128xf32>
    %cst_30 = arith.constant dense<0.000000e+00> : vector<8x128xf32>
    %74 = vector.multi_reduction <add>, %73, %cst_30 [1] : vector<8x3x128xf32> to vector<8x128xf32>
    %75 = arith.addf %71, %74 : vector<8x128xf32>
    %c0_31 = arith.constant 0 : index
    %c0_32 = arith.constant 0 : index
    %76 = vector.load %arg8[%c0_31, %c0_32] : memref<128x128xf32, #tpu.memory_space<vmem>>, vector<128x128xf32>
    %cst_33 = arith.constant dense<0.000000e+00> : vector<8x128xf32>
    %77 = tpu.matmul %75, %76, %cst_33 {dimension_numbers = #tpu.dot_dimension_numbers<[1], [0], [0], [1], [0, 0, 1, 1], [], []>} : vector<8x128xf32>, vector<128x128xf32>, vector<8x128xf32> -> vector<8x128xf32>
    %c0_34 = arith.constant 0 : index
    %c0_35 = arith.constant 0 : index
    %78 = vector.load %arg9[%c0_34, %c0_35] : memref<1x128xf32, #tpu.memory_space<vmem>>, vector<1x128xf32>
    %79 = vector.broadcast %78 : vector<1x128xf32> to vector<8x128xf32>
    %80 = arith.addf %77, %79 : vector<8x128xf32>
    %cst_36 = arith.constant 0.000000e+00 : f32
    %81 = vector.broadcast %cst_36 : f32 to vector<8x128xf32>
    %82 = arith.maximumf %80, %81 : vector<8x128xf32>
    %c0_37 = arith.constant 0 : index
    %c0_38 = arith.constant 0 : index
    %83 = vector.load %arg10[%c0_37, %c0_38] : memref<128x128xf32, #tpu.memory_space<vmem>>, vector<128x128xf32>
    %cst_39 = arith.constant dense<0.000000e+00> : vector<8x128xf32>
    %84 = tpu.matmul %82, %83, %cst_39 {dimension_numbers = #tpu.dot_dimension_numbers<[1], [0], [0], [1], [0, 0, 1, 1], [], []>} : vector<8x128xf32>, vector<128x128xf32>, vector<8x128xf32> -> vector<8x128xf32>
    %c0_40 = arith.constant 0 : index
    %c0_41 = arith.constant 0 : index
    %85 = vector.load %arg11[%c0_40, %c0_41] : memref<1x128xf32, #tpu.memory_space<vmem>>, vector<1x128xf32>
    %86 = vector.broadcast %85 : vector<1x128xf32> to vector<8x128xf32>
    %87 = arith.addf %84, %86 : vector<8x128xf32>
    %c0_42 = arith.constant 0 : index
    %c0_43 = arith.constant 0 : index
    %88 = vector.load %arg12[%c0_42, %c0_43] : memref<8x128xf32, #tpu.memory_space<vmem>>, vector<8x128xf32>
    tpu.vector_store %arg12[%c0_42, %c0_43], %87 {strides = array<i32>} : memref<8x128xf32, #tpu.memory_space<vmem>>, vector<8x128xf32>,
    return
  }
  func.func @transform_0(%arg0: i32) -> (i32, i32, i32) {
    %c0_i32 = arith.constant 0 : i32
    %c0_i32_0 = arith.constant 0 : i32
    %c0_i32_1 = arith.constant 0 : i32
    return %arg0, %c0_i32, %c0_i32_0 : i32, i32, i32
  }
  func.func @transform_1(%arg0: i32) -> (i32, i32, i32) {
    %c0_i32 = arith.constant 0 : i32
    %c0_i32_0 = arith.constant 0 : i32
    %c0_i32_1 = arith.constant 0 : i32
    return %arg0, %c0_i32, %c0_i32_0 : i32, i32, i32
  }
  func.func @transform_2(%arg0: i32) -> (i32, i32, i32) {
    %c0_i32 = arith.constant 0 : i32
    %c0_i32_0 = arith.constant 0 : i32
    %c0_i32_1 = arith.constant 0 : i32
    return %arg0, %c0_i32, %c0_i32_0 : i32, i32, i32
  }
  func.func @transform_3(%arg0: i32) -> (i32, i32) {
    %c0_i32 = arith.constant 0 : i32
    %c0_i32_0 = arith.constant 0 : i32
    %c0_i32_1 = arith.constant 0 : i32
    return %c0_i32, %c0_i32_0 : i32, i32
  }
  func.func @transform_4(%arg0: i32) -> (i32, i32) {
    %c0_i32 = arith.constant 0 : i32
    %c0_i32_0 = arith.constant 0 : i32
    %c0_i32_1 = arith.constant 0 : i32
    return %c0_i32, %c0_i32_0 : i32, i32
  }
  func.func @transform_5(%arg0: i32) -> (i32, i32) {
    %c0_i32 = arith.constant 0 : i32
    %c0_i32_0 = arith.constant 0 : i32
    %c0_i32_1 = arith.constant 0 : i32
    return %c0_i32, %c0_i32_0 : i32, i32
  }
  func.func @transform_6(%arg0: i32) -> (i32, i32) {
    %c0_i32 = arith.constant 0 : i32
    %c0_i32_0 = arith.constant 0 : i32
    %c0_i32_1 = arith.constant 0 : i32
    return %c0_i32, %c0_i32_0 : i32, i32
  }
  func.func @transform_7(%arg0: i32) -> (i32, i32) {
    %c0_i32 = arith.constant 0 : i32
    %c0_i32_0 = arith.constant 0 : i32
    %c0_i32_1 = arith.constant 0 : i32
    return %c0_i32, %c0_i32_0 : i32, i32
  }
  func.func @transform_8(%arg0: i32) -> (i32, i32) {
    %c0_i32 = arith.constant 0 : i32
    %c0_i32_0 = arith.constant 0 : i32
    %c0_i32_1 = arith.constant 0 : i32
    return %c0_i32, %c0_i32_0 : i32, i32
  }
  func.func @transform_9(%arg0: i32) -> (i32, i32) {
    %c0_i32 = arith.constant 0 : i32
    %c0_i32_0 = arith.constant 0 : i32
    %c0_i32_1 = arith.constant 0 : i32
    return %c0_i32, %c0_i32_0 : i32, i32
  }
  func.func @transform_10(%arg0: i32) -> (i32, i32) {
    %c0_i32 = arith.constant 0 : i32
    %c0_i32_0 = arith.constant 0 : i32
    %c0_i32_1 = arith.constant 0 : i32
    return %c0_i32, %c0_i32_0 : i32, i32
  }
  func.func @transform_11(%arg0: i32) -> (i32, i32) {
    %c0_i32 = arith.constant 0 : i32
    %c0_i32_0 = arith.constant 0 : i32
    return %arg0, %c0_i32 : i32, i32
  }
}

</mosaic_0001>

<bundles_post_ra>
// kernel: tpu_custom_call.1
= control target key start
LH: loop header
LB: loop body
LE: loop exit
PB: predicated region body
PF: predicated region fallthrough
CT: control target
= control target key end

     0   :  { %s4855_s0 = inlined_call_operand.vmem [shape: f32[16,8,128], index: 0, kind: input, shape index: {}]   ;;  %s4856_s1 = inlined_call_operand.vmem [shape: f32[16,8,10], index: 1, kind: input, shape index: {}]   ;;  %s4857_s2 = inlined_call_operand.vmem [shape: f32[16,3,16], index: 2, kind: input, shape index: {}]   ;;  %s4858_s3 = inlined_call_operand.vmem [shape: f32[10,128], index: 3, kind: input, shape index: {}]   ;;  %s4859_s4 = inlined_call_operand.vmem [shape: f32[1,128], index: 4, kind: input, shape index: {}]   ;;  %s4860_s5 = inlined_call_operand.vmem [shape: f32[16,128], index: 5, kind: input, shape index: {}]   ;;  %s4861_s6 = inlined_call_operand.vmem [shape: f32[1,128], index: 6, kind: input, shape index: {}]   ;;  %s4862_s7 = inlined_call_operand.vmem [shape: f32[128,128], index: 7, kind: input, shape index: {}]   ;;  %s4863_s8 = inlined_call_operand.vmem [shape: f32[1,128], index: 8, kind: input, shape index: {}]   ;;  %s4864_s9 = inlined_call_operand.hbm [shape: f32[128,128], index: 9, kind: input, shape index: {}]   ;;  %s4865_s10 = inlined_call_operand.vmem [shape: f32[1,128], index: 10, kind: input, shape index: {}]   ;;  %s4866_s11 = inlined_call_operand.hbm [shape: f32[16,128], index: 11, kind: output, shape index: {}]  }
   0x1   :  { %4914 = sst [smem:[#allocation42_spill]] %s4864_s9 }
   0x2   :  { %16 = vsyncpa [#allocation3], 0 }
   0x3   :  { %17 = vsyncpa [#allocation4], 0 }
   0x4   :  { %19 = vsyncpa [#allocation4 + $0x1], 0  ;;  %s3646_s17 = smov 0   ;;  %s3648_s18 = smov 0  }
   0x5   :  { %s3650_s19 = smov 0   ;;  %s3652_s20 = smov 0  }
   0x6 LB: > { %s3667_s21 = sadd.s32 4294967295, %s3575_s20   ;;  %s3106_s22 = sadd.s32 4294967294, %s3575_s20   ;;  %s3575_s20 = sphi %s3652_s20, %s5012_s20   ;;  %s3571_s19 = sphi %s3650_s19, %s5011_s19   ;;  %s3567_s18 = sphi %s3648_s18, %s5010_s18   ;;  %s3563_s17 = sphi %s3646_s17, %s5009_s17  }
   0x7   : > { %s3671_s23 = sadd.s32 1, %s3575_s20   ;;  %s278_s24 = sadd.s32 1, %s3571_s19 }
   0x8   : > { %s275_s25 = ssub.s32 %s3575_s20, %s3671_s23  ;;  %p288_p0 = scmp.ne.s32.totalorder %s3571_s19, %s3567_s18 }
   0x9   : > { %p276_p1 = scmp.eq.s32.totalorder %s275_s25, 0  ;;  %p289_p2 = scmp.eq.s32.totalorder %s3667_s21, 1 }
   0xa   : > { %p294_p3 = scmp.ne.s32.totalorder %s3567_s18, %s3563_s17  ;;  %p295_p4 = scmp.eq.s32.totalorder %s3106_s22, 1 }
   0xb   : > { %s3682_s26 = scalar_select %p276_p1, %s3571_s19, %s278_s24  }
   0xc   : > { %p3684_p5 = por %p289_p2, %p288_p0  ;;  %p3688_p6 = por %p295_p4, %p294_p3 }
   0xd   : > { %4915 = sst [smem:[#allocation8_spill]] %s3682_s26  ;;  %p3107_p7 = scmp.ge.s32.totalorder %s3575_s20, 1 }
   0xe   : > { %s4916_s27 = scalar_select %p3684_p5, 1, 0 }
   0xf   : > { %s4917_s28 = scalar_select %p3688_p6, 1, 0 }
  0x10   : > { %p302_p8 = scmp.lt.s32.totalorder %s3575_s20, 3  ;;  %p4867_p9 = scmp.eq.s32.totalorder %s3667_s21, 0 }
  0x11   : > { %s3577_s30 = smov [#allocation2]   ;;  %s4920_s9 = sld [smem:[#allocation42_spill]] }
  0x12   : > { %p3695_p10 = pnand %p3107_p7, %p302_p8  ;;  %s332_s12 = sshll.u32 %s3577_s30, 4  ;;  %s333_s12 = int_to_ptr.vmem [resolvable:$true] %s332_s12 }
  0x14   : > { %s4918_s29 = scalar_select %p3695_p10, 1, 0 }
  0x15   : > { %p3358_p11 = pneg %p3695_p10 }
  0x17   : > { %p3703_p12 = pnand %p4867_p9, %p3358_p11  ;;  %s3481_s16 = scalar_lea.hbm %s4920_s9, 2048 }
  0x18   : > { %p3482_p13 = scmp.ne.s32.totalorder %s4920_s9, %s3481_s16  ;;  %p3488_p3 = scmp.lt.u32.totalorder %s3481_s16, %s4920_s9 }
  0x19   : > { %p3483_p0 = pneg %p3703_p12 }
  0x1b   : > { %p3484_p1 = pnand %p3483_p0, %p3482_p13 }
  0x1d   : > { %p3485_p2 = pneg %p3484_p1 }
  0x1f   : > { %p3490_p4 = pnand %p3488_p3, %p3485_p2 }
  0x21   : > { %3493 = shalt.err (!%p3490_p4)
}
  0x22   : > { %s3494_s26 = scalar_lea.vmem %s333_s12, 2048  ;;  %p3502_p9 = scmp.lt.s32.totalorder %s333_s12, %s333_s12 }
  0x23   : > { %p3495_p7 = scmp.ne.s32.totalorder %s333_s12, %s3494_s26  ;;  %p3503_p6 = scmp.lt.s32.totalorder %s3494_s26, %s3494_s26 }
  0x25   : > { %p3497_p8 = pnand %p3495_p7, %p3483_p0  ;;  %p3504_p5 = por %p3503_p6, %p3502_p9 }
  0x27   : > { %p3498_p11 = pneg %p3497_p8 }
  0x29   : > { %p3505_p10 = pnand %p3504_p5, %p3498_p11 }
  0x2b   : > { %3508 = shalt.err (!%p3505_p10)
}
  0x2c   : > { %s3578_s14 = smov 128   ;;  %s3579_s15 = smov 8  }
  0x2d   : > { %3361 = dma.hbm_to_vmem [thread:$0]  (!%p3703_p12), %s4920_s9, 2048, %s333_s12, [#allocation3], %s3578_s14, %s3578_s14, %s3579_s15  }
  0x2e   : > { %p4921_p13 = scmp.ne.s32.totalorder %s4918_s29, 0 }
  0x30   : > { %378 = sbr.rel (%p4921_p13) target bundleno = 1076 (0x434), region = 64 }
  0x37   : > { %p4922_p1 = scmp.eq.s32.totalorder %s3667_s21, 0 }
  0x39   : > { %3554 = dma.done.wait (%p4922_p1), [#allocation3], 2048   ;;  %p4923_p0 = pmov %p4922_p1 }
  0x3a   : > { %s3113_s26 = sshll.u32 %s3667_s21, 3  ;;  %v640_v0 = vlaneseq  ;;  %v4878_v1 = vmov 0.0|0.0   ;;  %vm3581_vm0 = vmmov 0   ;;  %v3582_v2 = vmov 0.0   ;;  %v462_v8 = vld [vmem:[%s4858_s3] sm:$0xff]  ;;  %v814_v15 = vld [vmem:[%s4860_s5 + $0x8] sm:$0xff] }
  0x3b   : > { %3556 = vsyncadd (%p4923_p0), [#allocation3], 4294965248  ;;  %p429_p5 = scmp.lt.s32.totalorder %s3113_s26, 15  ;;  %3301 = vmatprep.subr.bf16.mxu1 %v4878_v1  ;;  %3216 = vmatprep.mubr.msk.f32.mxu1 %vm3581_vm0, %v3582_v2  ;;  %v3583_v3 = vmov 1966171168   ;;  %vm496_vm1 = vcmask 1041408  }
  0x3c   : > { %v638_v4 = vunpack.c.l.s4 %v3583_v3  ;;  %v3733_v5 = vshrl.u32 %v640_v0, 7  ;;  %vm471_vm2 = vcmask 80896   ;;  %vm3584_vm3 = vmmov 1   ;;  %v463_v9 = vld [vmem:[%s4858_s3 + $0x8] sm:$0x3]  ;;  %v813_v14 = vld [vmem:[%s4860_s5] sm:$0xff] }
  0x3d   : > { %s5014_s26 = smov (!%p429_p5, %s3113_s26), 15  ;;  %vm3735_vm4 = vmpackc.low %vm496_vm1, %vm3584_vm3  ;;  %v3295_v12 = vpack.c.bf16 %v463_v9, %v462_v8  ;;  %v3302_v16 = vpack.c.bf16 %v814_v15, %v813_v14  ;;  %vm969_vm5 = vcmask 130048   ;;  %vm1769_vm6 = vcmask 1042432   ;;  %s3144_s14 = sshll.u32 %s3667_s21, 7 }
  0x3e   : > { %v639_v6 = vunpack.c.0.s8 %v638_v4  ;;  %s3114_s29 = sshll.u32 %s5014_s26, 3  ;;  %s3118_s12 = sshll.u32 %s5014_s26, 2  ;;  %v3766_v13 = vsub.s32 0, %v3733_v5  ;;  %vm2817_vm7 = vcmask 1041409   ;;  %vm2819_vm8 = vcmask 1042434  }
  0x3f   : > { %s3742_s25 = scalar_lea.vmem %s4856_s1, %s3114_s29  ;;  %s3753_s9 = scalar_lea.vmem %s4857_s2, %s3118_s12  ;;  %3297 = vmatprep.subr.msk.bf16.mxu0 %vm3735_vm4, %v3295_v12  ;;  %3303 = vmatpush3.bf16.msra.mxu1 %v3302_v16  ;;  %vm2821_vm9 = vcmask 1043459   ;;  %vm2823_vm10 = vcmask 1044484   ;;  %vm2825_vm11 = vcmask 1045509   ;;  %vm2827_vm12 = vcmask 1046534  }
  0x40   : > { %v454_v10 = vld [vmem:[%s3742_s25] sm:$0xff]  ;;  %v3757_v11 = vsub.s32 %v639_v6, %v3733_v5  ;;  %s3763_s30 = scalar_lea.vmem %s4855_s0, %s3114_s29  ;;  %3300 = vmatpush3.bf16.msk.msra.mxu0 %vm3735_vm4, %v3295_v12  ;;  %v455_v18 = vld [vmem:[%s3742_s25 + $0x8] sm:$0xff]  ;;  %v456_v23 = vld [vmem:[%s3742_s25 + $0x10] sm:$0xff]  ;;  %3328 = vmatprep.subr.bf16.mxu1 %v4878_v1  ;;  %vm2829_vm13 = vcmask 1047559   ;;  %s425_s26 = sand.u32 1, %s3567_s18  }
  0x41   : > { %3200 = vmatprep.mubr.msk.f32.mxu0 %vm471_vm2, %v454_v10  ;;  %v3129_v17 = vld.sshfl [vmem:[%s3753_s9] sm:$0x13 pattern:$0x75316420]  ;;  %3304 = vmatprep.subr.bf16.mxu0 %v4878_v1  ;;  %v457_v38 = vld [vmem:[%s3742_s25 + $0x18] sm:$0xff]  ;;  %v459_v57 = vld [vmem:[%s3742_s25 + $0x28] sm:$0xff] }
  0x42   : > { %4926 = vst [vmem:[#allocation9_spill] sm:$0xff] %v3757_v11  ;;  %v3130_v19 = vld.sshfl [vmem:[%s3753_s9 + $0x4] sm:$0x13 pattern:$0x75316420]  ;;  %v636_v20 = vcombine.high %v3129_v17, %v3129_v17  ;;  %v643_v21 = vrot.slane %v3129_v17, %v3757_v11  ;;  %v460_v63 = vld [vmem:[%s3742_s25 + $0x30] sm:$0xff] }
  0x43   : > { %v3783_v22 = vld [vmem:[%s3763_s30] sm:$0xff]  ;;  %v3131_v24 = vld.sshfl [vmem:[%s3753_s9 + $0x8] sm:$0x13 pattern:$0x75316420]  ;;  %v659_v25 = vcombine.high %v3130_v19, %v3130_v19  ;;  %v666_v26 = vrot.slane %v3130_v19, %v3757_v11  ;;  %3201 = vmatmul.mubr.msk.f32.vlgmr.msra.gmra.mrb[0].mxu0 %vm471_vm2, %v455_v18  ;;  %v461_v19 = vld [vmem:[%s3742_s25 + $0x38] sm:$0xff] }
  0x44   : > { %v3790_v27 = vrot.slane %v3783_v22, %v3766_v13  ;;  %v650_v28 = vrot.slane %v636_v20, %v3757_v11  ;;  %v651_v29 = vcombine.high %v643_v21, %v643_v21  ;;  %v682_v30 = vcombine.high %v3131_v24, %v3131_v24  ;;  %v3132_v32 = vld.sshfl [vmem:[%s3753_s9 + $0xc] sm:$0x13 pattern:$0x75316420]  ;;  %3203 = vmatprep.mubr.msk.f32.mxu0 %vm471_vm2, %v456_v23  ;;  %v458_v44 = vld [vmem:[%s3742_s25 + $0x20] sm:$0xff]  ;;  %s3112_s13 = sshll.u32 %s425_s26, 3  ;;  %s4813_s25 = scalar_lea.hbm %s4866_s11, %s3144_s14 }
  0x45   : > { %v689_v31 = vrot.slane %v3131_v24, %v3757_v11  ;;  %v673_v33 = vrot.slane %v659_v25, %v3757_v11  ;;  %v674_v34 = vcombine.high %v666_v26, %v666_v26  ;;  %v3133_v35 = vld.sshfl [vmem:[%s3753_s9 + $0x10] sm:$0x13 pattern:$0x75316420]  ;;  %v705_v36 = vcombine.high %v3132_v32, %v3132_v32  ;;  %s427_s15 = scalar_lea.vmem [#allocation5], %s3112_s13  ;;  %p5006_p9 = scmp.ne.s32.totalorder %s4916_s27, 0 }
  0x46   : > { %v712_v37 = vrot.slane %v3132_v32, %v3757_v11  ;;  %v696_v39 = vrot.slane %v682_v30, %v3757_v11  ;;  %v822_v40 = vcombine.low %v643_v21, %v650_v28  ;;  %v823_v41 = vcombine.low %v651_v29, %v666_v26  ;;  %v3134_v42 = vld.sshfl [vmem:[%s3753_s9 + $0x14] sm:$0x13 pattern:$0x75316420]  ;;  %v450_v29 = vld [vmem:[%s3763_s30 + $0x20] sm:$0xff]  ;;  %s3011_s22 = sshll.u32 %s427_s15, 4  ;;  %s4815_s22 = int_to_ptr.vmem [resolvable:$true] %s3011_s22 }
  0x47   : > { %v697_v43 = vcombine.high %v689_v31, %v689_v31  ;;  %v824_v45 = vcombine.low %v673_v33, %v674_v34  ;;  %v719_v46 = vrot.slane %v705_v36, %v3757_v11  ;;  %v728_v48 = vcombine.high %v3133_v35, %v3133_v35  ;;  %3204 = vmatmul.mubr.msk.f32.gmra.mrb[2].mxu0 %vm471_vm2, %v457_v38  ;;  %v3135_v62 = vld.sshfl [vmem:[%s3753_s9 + $0x18] sm:$0x13 pattern:$0x75316420]  ;;  %v447_v34 = vld [vmem:[%s3763_s30 + $0x8] sm:$0xff]  ;;  %s3509_s24 = scalar_lea.vmem %s4815_s22, 128 }
  0x48   : > { %v720_v47 = vcombine.high %v712_v37, %v712_v37  ;;  %v825_v49 = vcombine.low %v689_v31, %v696_v39  ;;  %v832_v50 = vrot.slane %v822_v40, %v3757_v11  ;;  %v839_v51 = vrot.slane %v823_v41, %v3757_v11  ;;  %3206 = vmatprep.mubr.msk.f32.mxu0 %vm471_vm2, %v458_v44  ;;  %v3136_v4 = vld.sshfl [vmem:[%s3753_s9 + $0x1c] sm:$0x13 pattern:$0x75316420]  ;;  %p3510_p6 = scmp.ne.s32.totalorder %s4815_s22, %s3509_s24  ;;  %s3585_s21 = smov [#allocation5]  }
  0x49   : > { %v735_v52 = vrot.slane %v3133_v35, %v3757_v11  ;;  %v846_v53 = vrot.slane %v824_v45, %v3757_v11  ;;  %v742_v54 = vrot.slane %v728_v48, %v3757_v11  ;;  %v758_v55 = vrot.slane %v3134_v42, %v3757_v11  ;;  %s3513_s13 = sshll.u32 %s3585_s21, 4  ;;  %s3514_s13 = int_to_ptr.vmem [resolvable:$false] %s3513_s13 }
  0x4a   : > { %v871_v56 = vcombine.low %v697_v43, %v712_v37  ;;  %v853_v58 = vrot.slane %v825_v49, %v3757_v11  ;;  %v854_v59 = vcombine.low %v832_v50, %v839_v51  ;;  %v872_v61 = vcombine.low %v719_v46, %v720_v47  ;;  %v452_v46 = vld [vmem:[%s3763_s30 + $0x30] sm:$0xff]  ;;  %p3511_p10 = pnand %p3510_p6, %p5006_p9  ;;  %s3515_s16 = scalar_lea.vmem %s3514_s13, 256 }
  0x4b   : > { %v743_v60 = vcombine.high %v735_v52, %v735_v52  ;;  %v873_v0 = vcombine.low %v735_v52, %v742_v54  ;;  %v751_v6 = vcombine.high %v3134_v42, %v3134_v42  ;;  %v766_v7 = vcombine.high %v758_v55, %v758_v55  ;;  %3207 = vmatmul.mubr.msk.f32.gmra.mrb[4].mxu0 %vm471_vm2, %v459_v57  ;;  %v448_v57 = vld [vmem:[%s3763_s30 + $0x10] sm:$0xff]  ;;  %p3516_p2 = scmp.lt.s32.totalorder %s4815_s22, %s3514_s13  ;;  %p3517_p3 = scmp.lt.s32.totalorder %s3515_s16, %s3509_s24 }
  0x4c   : > { %v881_v3 = vrot.slane %v871_v56, %v3757_v11  ;;  %v855_v8 = vcombine.low %v846_v53, %v853_v58  ;;  %v862_v9 = vrot.slane %v854_v59, %v3757_v11  ;;  %v888_v12 = vrot.slane %v872_v61, %v3757_v11  ;;  %3209 = vmatprep.mubr.msk.f32.mxu0 %vm471_vm2, %v460_v63  ;;  %v449_v59 = vld [vmem:[%s3763_s30 + $0x18] sm:$0xff]  ;;  %v451_v63 = vld [vmem:[%s3763_s30 + $0x28] sm:$0xff]  ;;  %p3512_p12 = pneg %p3511_p10 }
  0x4d   : > { %v874_v10 = vcombine.low %v743_v60, %v758_v55  ;;  %v895_v14 = vrot.slane %v873_v0, %v3757_v11  ;;  %v765_v15 = vrot.slane %v751_v6, %v3757_v11  ;;  %v774_v16 = vcombine.high %v3135_v62, %v3135_v62  ;;  %p3518_p4 = por %p3517_p3, %p3516_p2 }
  0x4e   : > { %v781_v17 = vrot.slane %v3135_v62, %v3757_v11  ;;  %v869_v18 = vrot.slane %v855_v8, %v3757_v11  ;;  %v903_v21 = vcombine.low %v881_v3, %v888_v12  ;;  %v797_v23 = vcombine.high %v3136_v4, %v3136_v4 }
  0x4f   : > { %v902_v20 = vrot.slane %v874_v10, %v3757_v11  ;;  %v788_v24 = vrot.slane %v774_v16, %v3757_v11  ;;  %v804_v26 = vrot.slane %v3136_v4, %v3757_v11  ;;  %v920_v28 = vcombine.low %v765_v15, %v766_v7  ;;  %3210 = vmatmul.mubr.msk.f32.gmra.mrb[6].mxu0 %vm471_vm2, %v461_v19  ;;  %v453_v4 = vld [vmem:[%s3763_s30 + $0x38] sm:$0xff]  ;;  %v3119_v7 = vld [vmem:[%s4859_s4] ss:$0 sm:$0xff]  ;;  %p3519_p7 = pnand %p3518_p4, %p3512_p12 }
  0x50   : > { %v789_v25 = vcombine.high %v781_v17, %v781_v17  ;;  %v870_v30 = vcombine.low %v862_v9, %v869_v18  ;;  %v911_v32 = vrot.slane %v903_v21, %v3757_v11  ;;  %v811_v33 = vrot.slane %v797_v23, %v3757_v11  ;;  %3257 = vmatprep.mubr.msk.f32.mxu0 %vm3581_vm0, %v3582_v2 }
  0x51   : > { %v904_v31 = vcombine.low %v895_v14, %v902_v20  ;;  %v812_v35 = vcombine.high %v804_v26, %v804_v26  ;;  %v921_v36 = vcombine.low %v781_v17, %v788_v24  ;;  %v930_v38 = vrot.slane %v920_v28, %v3757_v11 }
  0x52   : > { %v922_v37 = vcombine.low %v789_v25, %v804_v26  ;;  %3217 = vmatmul.mubr.msk.f32.vlgmr.msra.gmra.mrb[0].mxu1 %vm969_vm5, %v870_v30  ;;  %v1265_v40 = vmul.f32 %v3790_v27, %v3783_v22  ;;  %v3844_v41 = vrot.slane %v450_v29, %v3766_v13  ;;  %v1240_v45 = vrot.slane %v447_v34, %v3766_v13 }
  0x53   : > { %v918_v39 = vrot.slane %v904_v31, %v3757_v11  ;;  %3219 = vmatprep.mubr.msk.f32.mxu1 %vm3581_vm0, %v3582_v2  ;;  %v923_v42 = vcombine.low %v811_v33, %v812_v35  ;;  %v937_v43 = vrot.slane %v921_v36, %v3757_v11  ;;  %v3858_v51 = vrot.slane %v452_v46, %v3766_v13 }
  0x54   : > { %v944_v44 = vrot.slane %v922_v37, %v3757_v11  ;;  %1273 = vadd.xlane.f32.xlu0 %v1265_v40  ;;  %v1269_v48 = vmul.f32 %v3844_v41, %v450_v29  ;;  %v1266_v50 = vmul.f32 %v1240_v45, %v447_v34  ;;  %v3870_v58 = vrot.slane %v448_v57, %v3766_v13 }
  0x55   : > { %v919_v47 = vcombine.low %v911_v32, %v918_v39  ;;  %v951_v22 = vrot.slane %v923_v42, %v3757_v11  ;;  %v952_v49 = vcombine.low %v930_v38, %v937_v43  ;;  %v1271_v54 = vmul.f32 %v3858_v51, %v452_v46 }
  0x56   : > { %1281 = vadd.xlane.f32.xlu1 %v1269_v48  ;;  %v1248_v60 = vrot.slane %v449_v59, %v3766_v13  ;;  %v1267_v61 = vmul.f32 %v3870_v58, %v448_v57  ;;  %v3877_v0 = vrot.slane %v451_v63, %v3766_v13  ;;  %v1327_v14 = vrot.slane %v3790_v27, %v3757_v11 }
  0x57   : > { %3220 = vmatmul.mubr.msk.f32.gmra.mrb[2].mxu1 %vm969_vm5, %v919_v47  ;;  %v953_v52 = vcombine.low %v944_v44, %v951_v22  ;;  %v960_v53 = vrot.slane %v952_v49, %v3757_v11  ;;  %v1419_v16 = vrot.slane %v3844_v41, %v3757_v11  ;;  %v1350_v17 = vrot.slane %v1240_v45, %v3757_v11 }
  0x58   : > { %3222 = vmatprep.mubr.msk.f32.mxu1 %vm3581_vm0, %v3582_v2  ;;  %1275 = vadd.xlane.f32.xlu0 %v1266_v50  ;;  %v1268_v62 = vmul.f32 %v1248_v60, %v449_v59  ;;  %v1270_v3 = vmul.f32 %v3877_v0, %v451_v63  ;;  %v1373_v18 = vrot.slane %v3870_v58, %v3757_v11 }
  0x59   : > { %v967_v55 = vrot.slane %v953_v52, %v3757_v11  ;;  %v3907_v25 = vrot.slane %v3858_v51, %v3757_v11  ;;  %v1396_v26 = vrot.slane %v1248_v60, %v3757_v11  ;;  %v1328_v28 = vcombine.high %v1327_v14, %v1327_v14 }
  0x5a   : > { %1285 = vadd.xlane.f32.xlu1 %v1271_v54  ;;  %v3911_v29 = vrot.slane %v1327_v14, %v3757_v11  ;;  %v1442_v31 = vrot.slane %v3877_v0, %v3757_v11  ;;  %v1420_v32 = vcombine.high %v1419_v16, %v1419_v16  ;;  %v3917_v33 = vrot.slane %v1419_v16, %v3757_v11 }
  0x5b   : > { %v968_v56 = vcombine.low %v960_v53, %v967_v55  ;;  %v1351_v34 = vcombine.high %v1350_v17, %v1350_v17  ;;  %v1374_v35 = vcombine.high %v1373_v18, %v1373_v18  ;;  %v3925_v40 = vrot.slane %v1350_v17, %v3757_v11 }
  0x5c   : > { %1277 = vadd.xlane.f32.xlu0 %v1267_v61  ;;  %v3928_v42 = vrot.slane %v1373_v18, %v3757_v11  ;;  %v1466_v43 = vcombine.high %v3907_v25, %v3907_v25  ;;  %v1397_v44 = vcombine.high %v1396_v26, %v1396_v26  ;;  %v1443_v48 = vcombine.high %v1442_v31, %v1442_v31 }
  0x5d   : > { %3223 = vmatmul.mubr.msk.f32.gmra.mrb[4].mxu1 %vm969_vm5, %v968_v56  ;;  %v3946_v49 = vrot.slane %v1396_v26, %v3757_v11  ;;  %v1342_v53 = vrot.slane %v1328_v28, %v3757_v11  ;;  %v1343_v54 = vcombine.high %v3911_v29, %v3911_v29  ;;  %v3953_v55 = vrot.slane %v1351_v34, %v3757_v11 }
  0x5e   : > { %3292 = vmatprep.mubr.msk.f32.mxu1 %vm3581_vm0, %v3582_v2  ;;  %v3882_v2 = vrot.slane %v453_v4, %v3766_v13  ;;  %v3959_v61 = vrot.slane %v1374_v35, %v3757_v11  ;;  %v3973_v16 = vrot.slane %v1397_v44, %v3757_v11  ;;  %v3988_v26 = vrot.slane %v1442_v31, %v3757_v11 }
  0x5f   : > { %v1412_v17 = vcombine.high %v3946_v49, %v3946_v49  ;;  %v3992_v28 = vrot.slane %v3907_v25, %v3757_v11  ;;  %v4009_v44 = vrot.slane %v1466_v43, %v3757_v11 }
  0x60   : > { %1279 = vadd.xlane.f32.xlu0 %v1268_v62  ;;  %v1272_v6 = vmul.f32 %v3882_v2, %v453_v4  ;;  %v1488_v46 = vrot.slane %v3882_v2, %v3757_v11  ;;  %v1389_v62 = vcombine.high %v3928_v42, %v3928_v42 }
  0x62   : > { %v1489_v4 = vcombine.high %v1488_v46, %v1488_v46  ;;  %v3995_v34 = vrot.slane %v1488_v46, %v3757_v11 }
  0x64   : > { %1283 = vadd.xlane.f32.xlu0 %v1270_v3  ;;  %v1504_v43 = vcombine.high %v3995_v34, %v3995_v34 }
  0x68   : > { %1287 = vadd.xlane.f32.xlu0 %v1272_v6 }
 0x116   : > { %v3202_v8 = vpop.f32.mrb[0].mxu0 }
 0x117   : > { %v3888_v9 = vadd.f32 %v3202_v8, %v3119_v7  ;;  %v566_v10 = vpop.f32.mrb[1].mxu0 }
 0x118   : > { %v3890_v12 = vadd.f32 %v3119_v7, %v566_v10 }
 0x119   : > { %4927 = vst [vmem:[#allocation10_spill] sm:$0xff] %v3888_v9  ;;  %v4876_v15 = vmax.f32 %v3888_v9, 0.0 }
 0x11a   : > { %4928 = vst [vmem:[#allocation11_spill] sm:$0xff] %v3890_v12  ;;  %v3205_v19 = vpop.f32.mrb[2].mxu0  ;;  %v4877_v20 = vmax.f32 %v3890_v12, 0.0 }
 0x11b   : > { %v3901_v21 = vadd.f32 %v3205_v19, %v3119_v7  ;;  %v576_v23 = vpop.f32.mrb[3].mxu0  ;;  %v1290_v24 = vmul.f32 %v1240_v45, %v4876_v15 }
 0x11c   : > { %v3919_v37 = vadd.f32 %v3119_v7, %v576_v23  ;;  %v1289_v39 = vmul.f32 %v3790_v27, %v4877_v20  ;;  %v3941_v27 = vld [vmem:[%s4861_s6] ss:$0 sm:$0xff]  ;;  %v3979_v23 = vrot.slane %v1443_v48, %v3757_v11 }
 0x11d   : > { %4929 = vst [vmem:[#allocation12_spill] sm:$0xff] %v3901_v21  ;;  %v4874_v30 = vmax.f32 %v3901_v21, 0.0  ;;  %1299 = vadd.xlane.f32.xlu1 %v1290_v24 }
 0x11e   : > { %v3208_v36 = vpop.f32.mrb[4].mxu0  ;;  %4930 = vst [vmem:[#allocation13_spill] sm:$0xff] %v3919_v37  ;;  %v4875_v56 = vmax.f32 %v3919_v37, 0.0 }
 0x11f   : > { %v586_v38 = vpop.f32.mrb[5].mxu0  ;;  %v3936_v47 = vadd.f32 %v3208_v36, %v3119_v7  ;;  %v1292_v22 = vmul.f32 %v1248_v60, %v4874_v30  ;;  %v1366_v60 = vcombine.high %v3925_v40, %v3925_v40 }
 0x120   : > { %v3932_v45 = vadd.f32 %v3119_v7, %v586_v38 }
 0x121   : > { %4932 = vst [vmem:[#allocation15_spill] sm:$0xff] %v3936_v47  ;;  %1297 = vadd.xlane.f32.xlu1 %v1289_v39  ;;  %v4872_v10 = vmax.f32 %v3936_v47, 0.0  ;;  %v1435_v39 = vcombine.high %v3917_v33, %v3917_v33 }
 0x122   : > { %4931 = vst [vmem:[#allocation14_spill] sm:$0xff] %v3932_v45  ;;  %v4873_v50 = vmax.f32 %v3932_v45, 0.0  ;;  %v3211_v52 = vpop.f32.mrb[6].mxu0 }
 0x123   : > { %v596_v59 = vpop.f32.mrb[7].mxu0  ;;  %v3970_v14 = vadd.f32 %v3211_v52, %v3119_v7  ;;  %v1294_v25 = vmul.f32 %v3877_v0, %v4872_v10  ;;  %v1458_v52 = vcombine.high %v3988_v26, %v3988_v26  ;;  %v1481_v0 = vcombine.high %v3992_v28, %v3992_v28 }
 0x124   : > { %v3964_v6 = vadd.f32 %v3119_v7, %v596_v59  ;;  %v1293_v8 = vmul.f32 %v3844_v41, %v4873_v50  ;;  %v3982_v41 = vrot.slane %v1420_v32, %v3757_v11  ;;  %v1291_v7 = vmul.f32 %v3870_v58, %v4875_v56 }
 0x125   : > { %v1042_v57 = vpop.f32.mrb[0].mxu1  ;;  %4934 = vst [vmem:[#allocation17_spill] sm:$0xff] %v3970_v14  ;;  %1303 = vadd.xlane.f32.xlu1 %v1292_v22  ;;  %v4870_v31 = vmax.f32 %v3970_v14, 0.0 }
 0x126   : > { %v1043_v63 = vadd.f32 %v3941_v27, %v1042_v57  ;;  %v3218_v3 = vpop.f32.mrb[1].mxu1  ;;  %4933 = vst [vmem:[#allocation16_spill] sm:$0xff] %v3964_v6  ;;  %v4871_v19 = vmax.f32 %v3964_v6, 0.0  ;;  %1305 = vadd.xlane.f32.xlu0 %v1293_v8  ;;  %v4020_v57 = vrot.slane %v1489_v4, %v3757_v11 }
 0x128   : > { %v1056_v18 = vmax.f32 %v1043_v63, 0.0  ;;  %v1295_v58 = vmul.f32 %v3858_v51, %v4871_v19 }
 0x129   : > { %1301 = vadd.xlane.f32.xlu1 %v1291_v7  ;;  %v1296_v7 = vmul.f32 %v3882_v2, %v4870_v31 }
 0x12a   : > { %v1047_v24 = vpop.f32.mrb[2].mxu1  ;;  %v1062_v35 = vcombine.high %v1056_v18, %v1056_v18  ;;  %v1069_v36 = vrot.slane %v1056_v18, %v3757_v11  ;;  %1309 = vadd.xlane.f32.xlu0 %v1295_v58 }
 0x12b   : > { %v1048_v32 = vadd.f32 %v3941_v27, %v1047_v24  ;;  %v3221_v38 = vpop.f32.mrb[3].mxu1 }
 0x12c   : > { %v1076_v46 = vrot.slane %v1062_v35, %v3757_v11  ;;  %v1077_v48 = vcombine.high %v1069_v36, %v1069_v36  ;;  %v4013_v22 = vrot.slane %v1069_v36, %v3757_v11 }
 0x12d   : > { %v1057_v51 = vmax.f32 %v1048_v32, 0.0  ;;  %1307 = vadd.xlane.f32.xlu1 %v1294_v25 }
 0x12e   : > { %v1078_v59 = vcombine.high %v1076_v46, %v1076_v46  ;;  %v4025_v63 = vrot.slane %v1076_v46, %v3757_v11  ;;  %v4028_v3 = vrot.slane %v1077_v48, %v3757_v11  ;;  %v4032_v8 = vcombine.high %v4013_v22, %v4013_v22 }
 0x12f   : > { %v1529_v18 = vmul.f32 %v3911_v29, %v4013_v22  ;;  %v1111_v24 = vcombine.high %v1057_v51, %v1057_v51  ;;  %v1118_v4 = vrot.slane %v1057_v51, %v3757_v11 }
 0x130   : > { %v4041_v35 = vrot.slane %v1078_v59, %v3757_v11  ;;  %v4045_v36 = vcombine.high %v4025_v63, %v4025_v63  ;;  %v4049_v32 = vcombine.high %v4028_v3, %v4028_v3  ;;  %v1052_v38 = vpop.f32.mrb[4].mxu1  ;;  %v1530_v58 = vmul.f32 %v1342_v53, %v4028_v3 }
 0x131   : > { %v1125_v25 = vrot.slane %v1111_v24, %v3757_v11  ;;  %v1126_v46 = vcombine.high %v1118_v4, %v1118_v4  ;;  %v4054_v2 = vrot.slane %v1118_v4, %v3757_v11  ;;  %v1053_v48 = vadd.f32 %v3941_v27, %v1052_v38  ;;  %v3224_v51 = vpop.f32.mrb[5].mxu1  ;;  %1311 = vadd.xlane.f32.xlu1 %v1296_v7 }
 0x132   : > { %4935 = vst [vmem:[#allocation18_spill] sm:$0xff] %v4041_v35  ;;  %4936 = vst [vmem:[#allocation19_spill] sm:$0xff] %v4045_v36  ;;  %v1531_v59 = vmul.f32 %v1343_v54, %v4032_v8  ;;  %v1577_v31 = vcombine.low %v1529_v18, %v1530_v58  ;;  %v1532_v19 = vmul.f32 %v3925_v40, %v4049_v32 }
 0x133   : > { %4937 = vst [vmem:[#allocation20_spill] sm:$0xff] %v4054_v2  ;;  %v1533_v53 = vmul.f32 %v3953_v55, %v4025_v63  ;;  %v1127_v24 = vcombine.high %v1125_v25, %v1125_v25  ;;  %v4066_v10 = vrot.slane %v1125_v25, %v3757_v11  ;;  %v4069_v4 = vrot.slane %v1126_v46, %v3757_v11 }
 0x134   : > { %v4073_v27 = vcombine.high %v4054_v2, %v4054_v2  ;;  %v1058_v29 = vmax.f32 %v1053_v48, 0.0  ;;  %v1584_v54 = vrot.slane %v1577_v31, %v3757_v11  ;;  %v1591_v18 = vrot.slane %v1531_v59, %v3757_v11 }
 0x135   : > { %4938 = vst [vmem:[#allocation21_spill] sm:$0xff] %v4066_v10  ;;  %4939 = vst [vmem:[#allocation22_spill] sm:$0xff] %v4069_v4  ;;  %v1534_v55 = vmul.f32 %v1366_v60, %v4041_v35  ;;  %v4082_v38 = vrot.slane %v1127_v24, %v3757_v11  ;;  %v1600_v58 = vcombine.low %v1532_v19, %v1533_v53 }
 0x136   : > { %4940 = vst [vmem:[#allocation23_spill] sm:$0xff] %v4073_v27  ;;  %v4086_v25 = vcombine.high %v4041_v35, %v4041_v35  ;;  %v1535_v7 = vmul.f32 %v3928_v42, %v4045_v36  ;;  %v1160_v46 = vcombine.high %v1058_v29, %v1058_v29  ;;  %v1167_v31 = vrot.slane %v1058_v29, %v3757_v11 }
 0x137   : > { %4941 = vst [vmem:[#allocation24_spill] sm:$0xff] %v4082_v38  ;;  %v1592_v48 = vcombine.low %v1584_v54, %v1591_v18  ;;  %v1614_v51 = vrot.slane %v1534_v55, %v3757_v11  ;;  %v1607_v40 = vrot.slane %v1600_v58, %v3757_v11  ;;  %v1537_v19 = vmul.f32 %v1389_v62, %v4054_v2 }
 0x138   : > { %4942 = vst [vmem:[#allocation25_spill] sm:$0xff] %v4086_v25  ;;  %v1536_v60 = vmul.f32 %v3959_v61, %v4086_v25  ;;  %v4101_v59 = vcombine.high %v4069_v4, %v4069_v4  ;;  %v1174_v53 = vrot.slane %v1160_v46, %v3757_v11  ;;  %v1175_v24 = vcombine.high %v1167_v31, %v1167_v31 }
 0x139   : > { %v4105_v29 = vrot.slane %v1167_v31, %v3757_v11  ;;  %v1599_v54 = vrot.slane %v1592_v48, %v3757_v11  ;;  %v1615_v18 = vcombine.low %v1607_v40, %v1614_v51  ;;  %v1637_v61 = vrot.slane %v1537_v19, %v3757_v11 }
 0x13a   : > { %4943 = vst [vmem:[#allocation26_spill] sm:$0xff] %v4101_v59  ;;  %v1623_v55 = vcombine.low %v1535_v7, %v1536_v60  ;;  %v1538_v42 = vmul.f32 %v3946_v49, %v4069_v4  ;;  %v1176_v62 = vcombine.high %v1174_v53, %v1174_v53  ;;  %v4112_v58 = vrot.slane %v1174_v53, %v3757_v11 }
 0x13b   : > { %4944 = vst [vmem:[#allocation27_spill] sm:$0xff] %v4105_v29  ;;  %v4115_v50 = vrot.slane %v1175_v24, %v3757_v11  ;;  %v4119_v46 = vcombine.high %v4105_v29, %v4105_v29  ;;  %v1545_v31 = vmul.f32 %v3979_v23, %v4105_v29  ;;  %v1770_v7 = vsel %vm1769_vm6, %v1599_v54, 0.0 }
 0x13c   : > { %4945 = vst [vmem:[#allocation28_spill] sm:$0xff] %v4112_v58  ;;  %v1622_v48 = vrot.slane %v1615_v18, %v3757_v11  ;;  %v1630_v51 = vrot.slane %v1623_v55, %v3757_v11  ;;  %v4127_v40 = vrot.slane %v1176_v62, %v3757_v11  ;;  %v4131_v60 = vcombine.high %v4112_v58, %v4112_v58 }
 0x13d   : > { %4946 = vst [vmem:[#allocation29_spill] sm:$0xff] %v4115_v50  ;;  %4947 = vst [vmem:[#allocation30_spill] sm:$0xff] %v4119_v46  ;;  %v4135_v19 = vcombine.high %v4115_v50, %v4115_v50  ;;  %1771 = vadd.xlane.f32.xlu0 %v1770_v7  ;;  %v1539_v23 = vmul.f32 %v3973_v16, %v4073_v27  ;;  %v1540_v54 = vmul.f32 %v1412_v17, %v4101_v59 }
 0x13e   : > { %4948 = vst [vmem:[#allocation31_spill] sm:$0xff] %v4127_v40  ;;  %4949 = vst [vmem:[#allocation32_spill] sm:$0xff] %v4131_v60  ;;  %v1773_v53 = vsel %vm1769_vm6, %v1622_v48, 0.0  ;;  %v1638_v24 = vcombine.low %v1630_v51, %v1637_v61  ;;  %v4146_v18 = vcombine.high %v4066_v10, %v4066_v10  ;;  %v1541_v62 = vmul.f32 %v3917_v33, %v4066_v10 }
 0x13f   : > { %4950 = vst [vmem:[#allocation33_spill] sm:$0xff] %v4135_v19  ;;  %1774 = vadd.xlane.f32.xlu1 %v1773_v53  ;;  %v1646_v55 = vcombine.low %v1538_v42, %v1539_v23  ;;  %v1542_v16 = vmul.f32 %v3982_v41, %v4082_v38  ;;  %v4154_v61 = vcombine.high %v4082_v38, %v4082_v38 }
 0x140   : > { %4951 = vst [vmem:[#allocation34_spill] sm:$0xff] %v4146_v18  ;;  %v1645_v7 = vrot.slane %v1638_v24, %v3757_v11  ;;  %v1660_v49 = vrot.slane %v1540_v54, %v3757_v11  ;;  %v1543_v17 = vmul.f32 %v1435_v39, %v4146_v18  ;;  %v1546_v42 = vmul.f32 %v1458_v52, %v4115_v50 }
 0x141   : > { %4952 = vst [vmem:[#allocation35_spill] sm:$0xff] %v4154_v61  ;;  %v1653_v41 = vrot.slane %v1646_v55, %v3757_v11  ;;  %v1669_v48 = vcombine.low %v1541_v62, %v1542_v16  ;;  %v1544_v51 = vmul.f32 %v3988_v26, %v4154_v61  ;;  %v1547_v23 = vmul.f32 %v3992_v28, %v4119_v46 }
 0x142   : > { %v1776_v53 = vsel %vm1769_vm6, %v1645_v7, 0.0  ;;  %v1683_v24 = vrot.slane %v1543_v17, %v3757_v11  ;;  %v1706_v33 = vrot.slane %v1546_v42, %v3757_v11  ;;  %v1548_v39 = vmul.f32 %v4009_v44, %v4135_v19 }
 0x143   : > { %1777 = vadd.xlane.f32.xlu0 %v1776_v53  ;;  %v1661_v52 = vcombine.low %v1653_v41, %v1660_v49  ;;  %v1676_v54 = vrot.slane %v1669_v48, %v3757_v11  ;;  %v1692_v55 = vcombine.low %v1544_v51, %v1545_v31  ;;  %v1549_v26 = vmul.f32 %v1481_v0, %v4112_v58 }
 0x144   : > { %v1715_v62 = vcombine.low %v1547_v23, %v1548_v39  ;;  %v4183_v16 = vcombine.high %v4127_v40, %v4127_v40  ;;  %v1550_v7 = vmul.f32 %v3995_v34, %v4127_v40  ;;  %v1551_v44 = vmul.f32 %v4020_v57, %v4131_v60 }
 0x145   : > { %v1668_v49 = vrot.slane %v1661_v52, %v3757_v11  ;;  %v1684_v17 = vcombine.low %v1676_v54, %v1683_v24  ;;  %v1699_v31 = vrot.slane %v1692_v55, %v3757_v11  ;;  %v1729_v42 = vrot.slane %v1549_v26, %v3757_v11 }
 0x146   : > { %4953 = vst [vmem:[#allocation36_spill] sm:$0xff] %v4183_v16  ;;  %v1722_v28 = vrot.slane %v1715_v62, %v3757_v11  ;;  %v1552_v0 = vmul.f32 %v1504_v43, %v4183_v16  ;;  %v1738_v41 = vcombine.low %v1550_v7, %v1551_v44  ;;  %v4208_v62 = vpop.xlane.xlu0 %1273 }
 0x147   : > { %v1779_v48 = vsel %vm1769_vm6, %v1668_v49, 0.0  ;;  %v1691_v51 = vrot.slane %v1684_v17, %v3757_v11  ;;  %v1707_v57 = vcombine.low %v1699_v31, %v1706_v33  ;;  %v4214_v49 = vpop.xlane.xlu1 %1281 }
 0x148   : > { %1780 = vadd.xlane.f32.xlu1 %v1779_v48  ;;  %v1730_v23 = vcombine.low %v1722_v28, %v1729_v42  ;;  %v1745_v53 = vrot.slane %v1738_v41, %v3757_v11  ;;  %v1752_v24 = vrot.slane %v1552_v0, %v3757_v11  ;;  %v1794_v48 = vrot.slane %v4208_v62, 4 }
 0x149   : > { %v1782_v39 = vsel %vm1769_vm6, %v1691_v51, 0.0  ;;  %v1714_v52 = vrot.slane %v1707_v57, %v3757_v11  ;;  %v1818_v51 = vrot.slane %v4214_v49, 4 }
 0x14a   : > { %1783 = vadd.xlane.f32.xlu0 %v1782_v39  ;;  %v1737_v34 = vrot.slane %v1730_v23, %v3757_v11  ;;  %v1753_v43 = vcombine.low %v1745_v53, %v1752_v24  ;;  %v4210_v7 = vpop.xlane.xlu0 %1275  ;;  %v1795_v24 = vmax.f32 %v4208_v62, %v1794_v48 }
 0x14b   : > { %v1785_v54 = vsel %vm1769_vm6, %v1714_v52, 0.0  ;;  %v4218_v31 = vpop.xlane.xlu1 %1285  ;;  %v1800_v57 = vrot.slane %v4210_v7, 4  ;;  %v1819_v52 = vmax.f32 %v4214_v49, %v1818_v51 }
 0x14c   : > { %1786 = vadd.xlane.f32.xlu1 %v1785_v54  ;;  %v1760_v55 = vrot.slane %v1753_v43, %v3757_v11  ;;  %v1788_v33 = vsel %vm1769_vm6, %v1737_v34, 0.0  ;;  %4954 = vst [vmem:[#allocation37_spill] sm:$0xff] %v4218_v31  ;;  %v1830_v23 = vrot.slane %v4218_v31, 4 }
 0x14d   : > { %v1801_v34 = vmax.f32 %v4210_v7, %v1800_v57  ;;  %v1820_v56 = vrot.slane %v1819_v52, 2 }
 0x14e   : > { %1789 = vadd.xlane.f32.xlu0 %v1788_v33  ;;  %v1791_v26 = vsel %vm1769_vm6, %v1760_v55, 0.0  ;;  %v4212_v44 = vpop.xlane.xlu0 %1277  ;;  %v1831_v54 = vmax.f32 %v4218_v31, %v1830_v23  ;;  %v1796_v55 = vrot.slane %v1795_v24, 2 }
 0x14f   : > { %v1806_v43 = vrot.slane %v4212_v44, 4  ;;  %v1802_v15 = vrot.slane %v1801_v34, 2  ;;  %v1821_v6 = vmax.f32 %v1819_v52, %v1820_v56 }
 0x150   : > { %1792 = vadd.xlane.f32.xlu1 %v1791_v26  ;;  %v1832_v23 = vrot.slane %v1831_v54, 2  ;;  %v1797_v60 = vmax.f32 %v1795_v24, %v1796_v55 }
 0x151   : > { %v1807_v20 = vmax.f32 %v4212_v44, %v1806_v43  ;;  %v1803_v47 = vmax.f32 %v1801_v34, %v1802_v15 }
 0x152   : > { %v4216_v17 = vpop.xlane.xlu0 %1279  ;;  %v1833_v55 = vmax.f32 %v1831_v54, %v1832_v23 }
 0x153   : > { %v1812_v33 = vrot.slane %v4216_v17, 4  ;;  %v1808_v45 = vrot.slane %v1807_v20, 2  ;;  %v1804_v34 = vrot.slane %v1803_v47, 1 }
 0x154   : > { %v1834_v12 = vrot.slane %v1833_v55, 1 }
 0x155   : > { %v1813_v40 = vmax.f32 %v4216_v17, %v1812_v33 }
 0x156   : > { %v4220_v42 = vpop.xlane.xlu0 %1283  ;;  %v4275_v4 = vmax.f32 %v1833_v55, %v1834_v12 }
 0x157   : > { %v1824_v26 = vrot.slane %v4220_v42, 4  ;;  %v1814_v9 = vrot.slane %v1813_v40, 2 }
 0x159   : > { %v1825_v14 = vmax.f32 %v4220_v42, %v1824_v26  ;;  %v1798_v26 = vrot.slane %v1797_v60, 1  ;;  %v1815_v23 = vmax.f32 %v1813_v40, %v1814_v9  ;;  %v4279_v9 = vsub.s32 1, %v3733_v5 }
 0x15a   : > { %v4224_v0 = vpop.xlane.xlu0 %1287 }
 0x15b   : > { %4955 = vst [vmem:[#allocation38_spill] sm:$0xff] %v4224_v0  ;;  %v1836_v58 = vrot.slane %v4224_v0, 4  ;;  %v1826_v56 = vrot.slane %v1825_v14, 2 }
 0x15d   : > { %v1837_v52 = vmax.f32 %v4224_v0, %v1836_v58  ;;  %v1827_v38 = vmax.f32 %v1825_v14, %v1826_v56  ;;  %v1816_v14 = vrot.slane %v1815_v23, 1 }
 0x15f   : > { %v1838_v10 = vrot.slane %v1837_v52, 2  ;;  %v1828_v40 = vrot.slane %v1827_v38, 1 }
 0x1aa   : > { %v4222_v28 = vpop.xlane.xlu1 %1299 }
 0x1ab   : > { %v1848_v48 = vrot.slane %v4222_v28, 4 }
 0x1ad   : > { %v1849_v19 = vmax.f32 %v4222_v28, %v1848_v48  ;;  %v1822_v48 = vrot.slane %v1821_v6, 1 }
 0x1ae   : > { %v4226_v41 = vpop.xlane.xlu1 %1297 }
 0x1af   : > { %v1842_v51 = vrot.slane %v4226_v41, 4  ;;  %v1850_v50 = vrot.slane %v1849_v19, 2  ;;  %v4271_v0 = vmax.f32 %v1821_v6, %v1822_v48  ;;  %v1839_v6 = vmax.f32 %v1837_v52, %v1838_v10 }
 0x1b0   : > { %v4295_v48 = vmax.f32 %v1815_v23, %v1816_v14 }
 0x1b1   : > { %v1843_v21 = vmax.f32 %v4226_v41, %v1842_v51  ;;  %v1809_v51 = vmax.f32 %v1807_v20, %v1808_v45 }
 0x1b2   : > { %v4232_v53 = vpop.xlane.xlu1 %1303 }
 0x1b3   : > { %v4235_v39 = vpop.xlane.xlu0 %1305  ;;  %v1860_v57 = vrot.slane %v4232_v53, 4  ;;  %v1844_v61 = vrot.slane %v1843_v21, 2  ;;  %v1810_v20 = vrot.slane %v1809_v51, 1 }
 0x1b4   : > { %v1866_v16 = vrot.slane %v4235_v39, 4 }
 0x1b5   : > { %v1861_v37 = vmax.f32 %v4232_v53, %v1860_v57  ;;  %v1845_v45 = vmax.f32 %v1843_v21, %v1844_v61 }
 0x1b6   : > { %v4243_v30 = vpop.xlane.xlu1 %1301  ;;  %v1867_v33 = vmax.f32 %v4235_v39, %v1866_v16  ;;  %v4267_v16 = vmax.f32 %v1797_v60, %v1798_v26 }
 0x1b7   : > { %v4249_v1 = vpop.xlane.xlu0 %1309  ;;  %v1854_v43 = vrot.slane %v4243_v30, 4  ;;  %v1862_v57 = vrot.slane %v1861_v37, 2 }
 0x1b8   : > { %4956 = vst [vmem:[#allocation39_spill] sm:$0xff] %v4249_v1  ;;  %v1878_v46 = vrot.slane %v4249_v1, 4  ;;  %v1868_v18 = vrot.slane %v1867_v33, 2 }
 0x1b9   : > { %v1855_v29 = vmax.f32 %v4243_v30, %v1854_v43  ;;  %v1851_v43 = vmax.f32 %v1849_v19, %v1850_v50  ;;  %v1863_v27 = vmax.f32 %v1861_v37, %v1862_v57  ;;  %v4282_v50 = vsub.s32 2, %v3733_v5 }
 0x1ba   : > { %v4260_v24 = vpop.xlane.xlu1 %1307  ;;  %v1879_v15 = vmax.f32 %v4249_v1, %v1878_v46  ;;  %v4273_v1 = vmax.f32 %v1803_v47, %v1804_v34  ;;  %v1869_v31 = vmax.f32 %v1867_v33, %v1868_v18  ;;  %v4288_v37 = vmax.f32 %v1809_v51, %v1810_v20 }
 0x1bb   : > { %v1872_v54 = vrot.slane %v4260_v24, 4  ;;  %v1856_v59 = vrot.slane %v1855_v29, 2  ;;  %v1852_v47 = vrot.slane %v1851_v43, 1  ;;  %v1846_v18 = vrot.slane %v1845_v45, 1 }
 0x1bc   : > { %v1880_v46 = vrot.slane %v1879_v15, 2  ;;  %v1864_v61 = vrot.slane %v1863_v27, 1  ;;  %v1870_v56 = vrot.slane %v1869_v31, 1  ;;  %v4297_v51 = vmax.f32 %v1827_v38, %v1828_v40  ;;  %v2786_v38 = vld [vmem:[%s4862_s7] sm:$0xff] }
 0x1bd   : > { %v1873_v60 = vmax.f32 %v4260_v24, %v1872_v54  ;;  %v1857_v26 = vmax.f32 %v1855_v29, %v1856_v59  ;;  %v1840_v59 = vrot.slane %v1839_v6, 1  ;;  %v1853_v34 = vmax.f32 %v1851_v43, %v1852_v47 }
 0x1be   : > { %v4269_v58 = vpop.xlane.xlu1 %1311  ;;  %v1881_v21 = vmax.f32 %v1879_v15, %v1880_v46  ;;  %v1847_v46 = vmax.f32 %v1845_v45, %v1846_v18  ;;  %v4299_v20 = vmax.f32 %v1863_v27, %v1864_v61  ;;  %v4303_v11 = vmax.f32 %v1869_v31, %v1870_v56  ;;  %v2787_v27 = vld [vmem:[%s4862_s7 + $0x8] sm:$0xff] }
 0x1bf   : > { %v1874_v10 = vrot.slane %v1873_v60, 2  ;;  %v1884_v5 = vrot.slane %v4269_v58, 4  ;;  %v1858_v57 = vrot.slane %v1857_v26, 1  ;;  %v3305_v47 = vpack.c.bf16 %v2787_v27, %v2786_v38 }
 0x1c0   : > { %v1882_v54 = vrot.slane %v1881_v21, 1  ;;  %v4314_v31 = vmax.f32 %v1839_v6, %v1840_v59  ;;  %v1891_v18 = vmax.f32 %v4273_v1, %v1853_v34  ;;  %v1890_v61 = vmax.f32 %v4267_v16, %v1847_v46  ;;  %v2788_v1 = vld [vmem:[%s4862_s7 + $0x10] sm:$0xff] }
 0x1c1   : > { %v1875_v35 = vmax.f32 %v1873_v60, %v1874_v10  ;;  %v1885_v23 = vmax.f32 %v4269_v58, %v1884_v5  ;;  %v1859_v60 = vmax.f32 %v1857_v26, %v1858_v57  ;;  %3306 = vmatpush3.bf16.msra.mxu0 %v3305_v47  ;;  %v4957_v26 = vmov 0.0|0.0  }
 0x1c2   : > { %3307 = vmatprep.subr.bf16.mxu0 %v4957_v26 }
 0x1c3   : > { %v1876_v5 = vrot.slane %v1875_v35, 1  ;;  %v1892_v34 = vmax.f32 %v4288_v37, %v1859_v60 }
 0x1ca   : > { %v4284_v19 = vpop.xlane.xlu0 %1771 }
 0x1cb   : > { %v1898_v12 = vsel %vm1769_vm6, %v4284_v19, -inf }
 0x1cc   : > { %v1899_v55 = vrot.slane %v1898_v12, 4  ;;  %v4290_v33 = vpop.xlane.xlu1 %1774 }
 0x1cd   : > { %v1905_v52 = vsel %vm1769_vm6, %v4290_v33, -inf }
 0x1ce   : > { %v1900_v29 = vmax.f32 %v1898_v12, %v1899_v55  ;;  %v1906_v15 = vrot.slane %v1905_v52, 4  ;;  %v4316_v12 = vmax.f32 %v1881_v21, %v1882_v54 }
 0x1d0   : > { %v1901_v2 = vrot.slane %v1900_v29, 2  ;;  %v1907_v25 = vmax.f32 %v1905_v52, %v1906_v15  ;;  %v4301_v36 = vpop.xlane.xlu0 %1777  ;;  %v1886_v52 = vrot.slane %v1885_v23, 2 }
 0x1d1   : > { %v1912_v14 = vsel %vm1769_vm6, %v4301_v36, -inf }
 0x1d2   : > { %v1902_v43 = vmax.f32 %v1900_v29, %v1901_v2  ;;  %v1908_v45 = vrot.slane %v1907_v25, 2  ;;  %v1913_v40 = vrot.slane %v1912_v14, 4  ;;  %v1893_v2 = vmax.f32 %v4295_v48, %v4299_v20  ;;  %v2793_v48 = vld [vmem:[%s4862_s7 + $0x38] sm:$0xff] }
 0x1d3   : > { %v4344_v47 = vmax.f32 %v1885_v23, %v1886_v52 }
 0x1d4   : > { %v1903_v55 = vrot.slane %v1902_v43, 1  ;;  %v1909_v56 = vmax.f32 %v1907_v25, %v1908_v45  ;;  %v1914_v10 = vmax.f32 %v1912_v14, %v1913_v40  ;;  %v2789_v25 = vld [vmem:[%s4862_s7 + $0x18] sm:$0xff]  ;;  %v4342_v40 = vmax.f32 %v1875_v35, %v1876_v5 }
 0x1d5   : > { %v4320_v15 = vpop.xlane.xlu1 %1780  ;;  %v3308_v14 = vpack.c.bf16 %v2789_v25, %v2788_v1 }
 0x1d6   : > { %v1904_v16 = vmax.f32 %v1902_v43, %v1903_v55  ;;  %v1910_v21 = vrot.slane %v1909_v56, 1  ;;  %v1915_v59 = vrot.slane %v1914_v10, 2  ;;  %v1919_v29 = vsel %vm1769_vm6, %v4320_v15, -inf }
 0x1d7   : > { %v1920_v57 = vrot.slane %v1919_v29, 4  ;;  %v4336_v54 = vpop.xlane.xlu0 %1783  ;;  %3309 = vmatpush3.bf16.msra.mxu0 %v3308_v14 }
 0x1d8   : > { %v1954_v38 = vmax.f32 %v1890_v61, %v1904_v16  ;;  %v1911_v27 = vmax.f32 %v1909_v56, %v1910_v21  ;;  %v1916_v45 = vmax.f32 %v1914_v10, %v1915_v59  ;;  %v1926_v43 = vsel %vm1769_vm6, %v4336_v54, -inf  ;;  %3310 = vmatprep.subr.bf16.mxu0 %v4957_v26 }
 0x1d9   : > { %v1921_v55 = vmax.f32 %v1919_v29, %v1920_v57  ;;  %v1927_v6 = vrot.slane %v1926_v43, 4  ;;  %v4346_v37 = vpop.xlane.xlu1 %1786 }
 0x1da   : > { %v1962_v60 = vsub.f32 %v4208_v62, %v1954_v38  ;;  %v1986_v46 = vsub.f32 %v4226_v41, %v1954_v38  ;;  %v2010_v61 = vsub.f32 %v4284_v19, %v1954_v38  ;;  %v1955_v56 = vmax.f32 %v1891_v18, %v1911_v27 }
 0x1db   : > { %v1917_v10 = vrot.slane %v1916_v45, 1  ;;  %v1922_v1 = vrot.slane %v1921_v55, 2  ;;  %v1928_v35 = vmax.f32 %v1926_v43, %v1927_v6  ;;  %v1933_v23 = vsel %vm1769_vm6, %v4346_v37, -inf }
 0x1dc   : > { %v1970_v5 = vmul.f32 1.442695, %v1962_v60  ;;  %v1994_v52 = vmul.f32 1.442695, %v1986_v46  ;;  %v2018_v25 = vmul.f32 1.442695, %v2010_v61  ;;  %v1963_v16 = vsub.f32 %v4210_v7, %v1955_v56 }
 0x1dd   : > { %v1987_v62 = vsub.f32 %v4222_v28, %v1955_v56  ;;  %v2011_v41 = vsub.f32 %v4290_v33, %v1955_v56  ;;  %v1918_v21 = vmax.f32 %v1916_v45, %v1917_v10  ;;  %v1923_v19 = vmax.f32 %v1921_v55, %v1922_v1  ;;  %v4360_v45 = vpop.xlane.xlu0 %1789  ;;  %v2791_v61 = vld [vmem:[%s4862_s7 + $0x28] sm:$0xff] }
 0x1de   : > { %3409 = vpow2.f32 %v1970_v5  ;;  %v1972_v18 = vmul.f32 1.442695, %v1963_v16  ;;  %v1929_v59 = vrot.slane %v1928_v35, 2  ;;  %v1934_v29 = vrot.slane %v1933_v23, 4 }
 0x1df   : > { %3411 = vpow2.f32 %v1994_v52  ;;  %v1996_v6 = vmul.f32 1.442695, %v1987_v62  ;;  %v2020_v57 = vmul.f32 1.442695, %v2011_v41  ;;  %v1956_v14 = vmax.f32 %v1892_v34, %v1918_v21  ;;  %v2790_v34 = vld [vmem:[%s4862_s7 + $0x20] sm:$0xff] }
 0x1e0   : > { %3413 = vpow2.f32 %v2018_v25  ;;  %v1924_v38 = vrot.slane %v1923_v19, 1  ;;  %v1930_v46 = vmax.f32 %v1928_v35, %v1929_v59  ;;  %v1935_v27 = vmax.f32 %v1933_v23, %v1934_v29  ;;  %v2792_v25 = vld [vmem:[%s4862_s7 + $0x30] sm:$0xff] }
 0x1e1   : > { %3415 = vpow2.f32 %v1972_v18  ;;  %v1964_v7 = vsub.f32 %v4212_v44, %v1956_v14  ;;  %v1988_v28 = vsub.f32 %v4243_v30, %v1956_v14  ;;  %v2012_v33 = vsub.f32 %v4301_v36, %v1956_v14 }
 0x1e2   : > { %3417 = vpow2.f32 %v1996_v6  ;;  %v1925_v43 = vmax.f32 %v1923_v19, %v1924_v38  ;;  %v1931_v55 = vrot.slane %v1930_v46, 1  ;;  %v1936_v60 = vrot.slane %v1935_v27, 2 }
 0x1e3   : > { %3419 = vpow2.f32 %v2020_v57  ;;  %v1974_v44 = vmul.f32 1.442695, %v1964_v7  ;;  %v1998_v56 = vmul.f32 1.442695, %v1988_v28  ;;  %v2022_v30 = vmul.f32 1.442695, %v2012_v33 }
 0x1e4   : > { %v1957_v36 = vmax.f32 %v1893_v2, %v1925_v43  ;;  %v1932_v10 = vmax.f32 %v1930_v46, %v1931_v55  ;;  %v1937_v1 = vmax.f32 %v1935_v27, %v1936_v60  ;;  %v1940_v35 = vsel %vm1769_vm6, %v4360_v45, -inf }
 0x1e5   : > { %3421 = vpow2.f32 %v1974_v44  ;;  %v1941_v5 = vrot.slane %v1940_v35, 4  ;;  %v3311_v52 = vpack.c.bf16 %v2791_v61, %v2790_v34  ;;  %v4958_v62 = vmax.f32 %v4271_v0, %v4303_v11 }
 0x1e6   : > { %3423 = vpow2.f32 %v1998_v56  ;;  %v1965_v20 = vsub.f32 %v4216_v17, %v1957_v36  ;;  %v1989_v2 = vsub.f32 %v4232_v53, %v1957_v36  ;;  %v2013_v16 = vsub.f32 %v4320_v15, %v1957_v36 }
 0x1e7   : > { %3425 = vpow2.f32 %v2022_v30  ;;  %v4387_v41 = vmax.f32 %v4958_v62, %v1932_v10  ;;  %v1938_v21 = vrot.slane %v1937_v1, 1  ;;  %v4389_v19 = vmax.f32 %v1940_v35, %v1941_v5  ;;  %3312 = vmatpush3.bf16.msra.mxu0 %v3311_v52 }
 0x1e8   : > { %v4391_v18 = vpop.eup %3409  ;;  %v1976_v59 = vmul.f32 1.442695, %v1965_v20  ;;  %v2000_v29 = vmul.f32 1.442695, %v1989_v2  ;;  %v2024_v6 = vmul.f32 1.442695, %v2013_v16  ;;  %3313 = vmatprep.subr.bf16.mxu0 %v4957_v26  ;;  %v3314_v17 = vpack.c.bf16 %v2793_v48, %v2792_v25 }
 0x1e9   : > { %v4394_v53 = vpop.eup %3411  ;;  %v2034_v15 = vrot.slane %v4391_v18, 4  ;;  %v1966_v11 = vsub.f32 %v4214_v49, %v4387_v41  ;;  %v1990_v0 = vsub.f32 %v4235_v39, %v4387_v41  ;;  %v4406_v46 = vmax.f32 %v1937_v1, %v1938_v21 }
 0x1ea   : > { %v4403_v14 = vpop.eup %3413  ;;  %v2082_v38 = vrot.slane %v4394_v53, 4  ;;  %3427 = vpow2.f32 %v1976_v59 }
 0x1eb   : > { %v4409_v7 = vpop.eup %3415  ;;  %v2035_v28 = vadd.f32 %v4391_v18, %v2034_v15  ;;  %v2138_v49 = vsel %vm1769_vm6, %v4403_v14, 0.0  ;;  %3429 = vpow2.f32 %v2000_v29  ;;  %v1978_v39 = vmul.f32 1.442695, %v1966_v11  ;;  %3315 = vmatpush3.bf16.msra.mxu0 %v3314_v17 }
 0x1ec   : > { %v4414_v33 = vpop.eup %3417  ;;  %v2083_v43 = vadd.f32 %v4394_v53, %v2082_v38  ;;  %v2139_v55 = vrot.slane %v2138_v49, 4  ;;  %v2040_v60 = vrot.slane %v4409_v7, 4  ;;  %3431 = vpow2.f32 %v2024_v6  ;;  %3316 = vmatprep.subr.bf16.mxu0 %v4957_v26 }
 0x1ed   : > { %4959 = vst [vmem:[#allocation40_spill] sm:$0xff] %v4414_v33  ;;  %v4419_v34 = vpop.eup %3419  ;;  %v2036_v61 = vrot.slane %v2035_v28, 2  ;;  %v2088_v44 = vrot.slane %v4414_v33, 4  ;;  %3433 = vpow2.f32 %v1978_v39  ;;  %v2002_v56 = vmul.f32 1.442695, %v1990_v0 }
 0x1ee   : > { %v2084_v30 = vrot.slane %v2083_v43, 2  ;;  %v2140_v36 = vadd.f32 %v2139_v55, %v2138_v49  ;;  %v2041_v10 = vadd.f32 %v4409_v7, %v2040_v60  ;;  %v2145_v1 = vsel %vm1769_vm6, %v4419_v34, 0.0 }
 0x1ef   : > { %v4425_v35 = vpop.eup %3421  ;;  %v2037_v5 = vadd.f32 %v2036_v61, %v2035_v28  ;;  %v2089_v52 = vadd.f32 %v4414_v33, %v2088_v44  ;;  %v2146_v25 = vrot.slane %v2145_v1, 4  ;;  %3435 = vpow2.f32 %v2002_v56 }
 0x1f0   : > { %v4428_v48 = vpop.eup %3423  ;;  %v2085_v20 = vadd.f32 %v2084_v30, %v2083_v43  ;;  %v2141_v2 = vrot.slane %v2140_v36, 2  ;;  %v2042_v16 = vrot.slane %v2041_v10, 2  ;;  %v2046_v62 = vrot.slane %v4425_v35, 4 }
 0x1f1   : > { %4960 = vst [vmem:[#allocation41_spill] sm:$0xff] %v4428_v48  ;;  %v4431_v21 = vpop.eup %3425  ;;  %v2038_v59 = vrot.slane %v2037_v5, 1  ;;  %v2090_v29 = vrot.slane %v2089_v52, 2  ;;  %v2147_v6 = vadd.f32 %v2146_v25, %v2145_v1  ;;  %v2094_v17 = vrot.slane %v4428_v48, 4 }
 0x1f2   : > { %v2086_v15 = vrot.slane %v2085_v20, 1  ;;  %v2142_v11 = vadd.f32 %v2141_v2, %v2140_v36  ;;  %v2043_v0 = vadd.f32 %v2042_v16, %v2041_v10  ;;  %v2047_v38 = vadd.f32 %v4425_v35, %v2046_v62 }
 0x1f3   : > { %v2039_v28 = vadd.f32 %v2038_v59, %v2037_v5  ;;  %v2091_v49 = vadd.f32 %v2090_v29, %v2089_v52  ;;  %v2148_v39 = vrot.slane %v2147_v6, 2  ;;  %v2095_v43 = vadd.f32 %v4428_v48, %v2094_v17 }
 0x1f4   : > { %v4436_v55 = vpop.eup %3427  ;;  %v2087_v60 = vadd.f32 %v2086_v15, %v2085_v20  ;;  %v2143_v61 = vrot.slane %v2142_v11, 1  ;;  %v2044_v44 = vrot.slane %v2043_v0, 1  ;;  %v2048_v56 = vrot.slane %v2047_v38, 2 }
 0x1f5   : > { %v4438_v30 = vpop.eup %3429  ;;  %v2092_v1 = vrot.slane %v2091_v49, 1  ;;  %v2149_v25 = vadd.f32 %v2148_v39, %v2147_v6  ;;  %v2096_v27 = vrot.slane %v2095_v43, 2  ;;  %v2152_v36 = vsel %vm1769_vm6, %v4431_v21, 0.0 }
 0x1f6   : > { %v4442_v10 = vpop.eup %3431  ;;  %v2130_v5 = vadd.f32 %v2087_v60, %v2039_v28  ;;  %v2144_v52 = vadd.f32 %v2143_v61, %v2142_v11  ;;  %v2045_v2 = vadd.f32 %v2044_v44, %v2043_v0  ;;  %v2049_v16 = vadd.f32 %v2048_v56, %v2047_v38 }
 0x1f7   : > { %v4444_v62 = vpop.eup %3433  ;;  %v2093_v20 = vadd.f32 %v2092_v1, %v2091_v49  ;;  %v2150_v59 = vrot.slane %v2149_v25, 1  ;;  %v2097_v29 = vadd.f32 %v2096_v27, %v2095_v43  ;;  %v2153_v17 = vrot.slane %v2152_v36, 4 }
 0x1f8   : > { %v2194_v15 = vadd.f32 %v2144_v52, %v2130_v5  ;;  %v2050_v23 = vrot.slane %v2049_v16, 1  ;;  %v2052_v6 = vrot.slane %v4436_v55, 4  ;;  %v2100_v39 = vrot.slane %v4438_v30, 4 }
 0x1f9   : > { %v4448_v57 = vpop.eup %3435  ;;  %v2131_v48 = vadd.f32 %v2093_v20, %v2045_v2  ;;  %v2151_v33 = vadd.f32 %v2150_v59, %v2149_v25  ;;  %v2098_v28 = vrot.slane %v2097_v29, 1  ;;  %v2154_v11 = vadd.f32 %v2153_v17, %v2152_v36 }
 0x1fa   : > { %3437 = vrcp.f32 %v2194_v15  ;;  %v2051_v0 = vadd.f32 %v2050_v23, %v2049_v16  ;;  %v2053_v38 = vadd.f32 %v4436_v55, %v2052_v6  ;;  %v2101_v49 = vadd.f32 %v4438_v30, %v2100_v39 }
 0x1fb   : > { %v2195_v27 = vadd.f32 %v2151_v33, %v2131_v48  ;;  %v2099_v43 = vadd.f32 %v2098_v28, %v2097_v29  ;;  %v2155_v60 = vrot.slane %v2154_v11, 2  ;;  %v2159_v61 = vsel %vm1769_vm6, %v4442_v10, 0.0 }
 0x1fc   : > { %v2054_v44 = vrot.slane %v2053_v38, 2  ;;  %v2102_v56 = vrot.slane %v2101_v49, 2  ;;  %v2160_v1 = vrot.slane %v2159_v61, 4  ;;  %v4961_v25 = vsub.f32 %v4336_v54, %v4387_v41 }
 0x1fd   : > { %3439 = vrcp.f32 %v2195_v27  ;;  %v2132_v36 = vadd.f32 %v2099_v43, %v2051_v0  ;;  %v2156_v23 = vadd.f32 %v2155_v60, %v2154_v11  ;;  %v2058_v52 = vrot.slane %v4444_v62, 4 }
 0x1fe   : > { %v2026_v5 = vmul.f32 1.442695, %v4961_v25  ;;  %v2055_v2 = vadd.f32 %v2054_v44, %v2053_v38  ;;  %v2103_v16 = vadd.f32 %v2102_v56, %v2101_v49  ;;  %v2161_v33 = vadd.f32 %v2160_v1, %v2159_v61 }
 0x1ff   : > { %v2157_v48 = vrot.slane %v2156_v23, 1  ;;  %v2059_v20 = vadd.f32 %v4444_v62, %v2058_v52  ;;  %v2106_v59 = vrot.slane %v4448_v57, 4  ;;  %v4962_v29 = vmax.f32 %v4297_v51, %v4342_v40 }
 0x200   : > { %3441 = vpow2.f32 %v2026_v5  ;;  %v2056_v41 = vrot.slane %v2055_v2, 1  ;;  %v2104_v17 = vrot.slane %v2103_v16, 1  ;;  %v2162_v15 = vrot.slane %v2161_v33, 2 }
 0x201   : > { %v1959_v54 = vmax.f32 %v4962_v29, %v4406_v46  ;;  %v4963_v6 = vrot.slane %v4389_v19, 2  ;;  %v2158_v28 = vadd.f32 %v2157_v48, %v2156_v23  ;;  %v2060_v11 = vrot.slane %v2059_v20, 2 }
 0x202   : > { %v2107_v0 = vadd.f32 %v4448_v57, %v2106_v59  ;;  %v2057_v49 = vadd.f32 %v2056_v41, %v2055_v2  ;;  %v2105_v27 = vadd.f32 %v2104_v17, %v2103_v16  ;;  %v2163_v43 = vadd.f32 %v2162_v15, %v2161_v33 }
 0x203   : > { %v1944_v39 = vmax.f32 %v4389_v19, %v4963_v6  ;;  %v1967_v38 = vsub.f32 %v4220_v42, %v1959_v54  ;;  %v1991_v60 = vsub.f32 %v4260_v24, %v1959_v54  ;;  %v2196_v51 = vadd.f32 %v2158_v28, %v2132_v36  ;;  %v4490_v6 = vpop.xlane.xlu1 %1792 }
 0x204   : > { %v2061_v40 = vadd.f32 %v2060_v11, %v2059_v20  ;;  %v2108_v46 = vrot.slane %v2107_v0, 2  ;;  %v4470_v44 = vpop.eup %3437  ;;  %v2133_v56 = vadd.f32 %v2105_v27, %v2057_v49  ;;  %v2164_v1 = vrot.slane %v2163_v43, 1 }
 0x205   : > { %v1980_v61 = vmul.f32 1.442695, %v1967_v38  ;;  %v2004_v19 = vmul.f32 1.442695, %v1991_v60  ;;  %v2015_v25 = vsub.f32 %v4346_v37, %v1959_v54  ;;  %v1888_v5 = vrot.slane %v4344_v47, 1  ;;  %v4964_v60 = vld [vmem:[#allocation18_spill] sm:$0xff] }
 0x206   : > { %v2226_v42 = vmul.f32 %v4470_v44, %v4403_v14  ;;  %3443 = vrcp.f32 %v2196_v51  ;;  %v2109_v23 = vadd.f32 %v2108_v46, %v2107_v0  ;;  %v2165_v52 = vadd.f32 %v2164_v1, %v2163_v43 }
 0x207   : > { %v2062_v24 = vrot.slane %v2061_v40, 1  ;;  %3445 = vpow2.f32 %v1980_v61  ;;  %v2028_v36 = vmul.f32 1.442695, %v2015_v25  ;;  %v4476_v2 = vpop.eup %3439  ;;  %v1945_v37 = vrot.slane %v1944_v39, 1  ;;  %v2796_v25 = vld [vmem:[%s4862_s7 + $0x50] sm:$0xff] }
 0x208   : > { %v2365_v16 = vrot.slane %v2226_v42, %v3766_v13  ;;  %v2369_v33 = vrot.slane %v2226_v42, %v4279_v9  ;;  %v2373_v48 = vrot.slane %v2226_v42, %v4282_v50  ;;  %v2227_v14 = vmul.f32 %v4476_v2, %v4419_v34 }
 0x209   : > { %v2197_v59 = vadd.f32 %v2165_v52, %v2133_v56  ;;  %v2110_v29 = vrot.slane %v2109_v23, 1  ;;  %3447 = vpow2.f32 %v2004_v19  ;;  %v2063_v38 = vadd.f32 %v2062_v24, %v2061_v40  ;;  %v4965_v40 = vld [vmem:[#allocation9_spill] sm:$0xff] }
 0x20a   : > { %v4481_v20 = vpop.eup %3441  ;;  %v2482_v54 = vmul.f32 %v2365_v16, %v4013_v22  ;;  %v2483_v41 = vmul.f32 %v2369_v33, %v4028_v3  ;;  %v2484_v17 = vmul.f32 %v2373_v48, %v4032_v8  ;;  %v2377_v28 = vrot.slane %v2227_v14, %v3766_v13  ;;  %v2794_v3 = vld [vmem:[%s4862_s7 + $0x40] sm:$0xff]  ;;  %v2795_v8 = vld [vmem:[%s4862_s7 + $0x48] sm:$0xff] }
 0x20b   : > { %v2166_v15 = vsel %vm1769_vm6, %v4481_v20, 0.0  ;;  %v2381_v11 = vrot.slane %v2227_v14, %v4279_v9  ;;  %v2385_v34 = vrot.slane %v2227_v14, %v4282_v50  ;;  %3449 = vrcp.f32 %v2197_v59 }
 0x20c   : > { %v2530_v0 = vcombine.low %v2482_v54, %v2483_v41  ;;  %v2111_v49 = vadd.f32 %v2110_v29, %v2109_v23  ;;  %v2167_v22 = vrot.slane %v2166_v15, 4  ;;  %v2485_v27 = vmul.f32 %v2377_v28, %v4049_v32  ;;  %v2797_v32 = vld [vmem:[%s4862_s7 + $0x58] sm:$0xff] }
 0x20d   : > { %v2486_v43 = vmul.f32 %v2381_v11, %v4025_v63  ;;  %v2487_v51 = vmul.f32 %v2385_v34, %v4964_v60  ;;  %v1947_v46 = vsel %vm1769_vm6, %v4490_v6, -inf  ;;  %v2544_v56 = vrot.slane %v2484_v17, %v4965_v40  ;;  %v4968_v60 = vld [vmem:[#allocation25_spill] sm:$0xff] }
 0x20e   : > { %v2537_v61 = vrot.slane %v2530_v0, %v4965_v40  ;;  %v2168_v1 = vadd.f32 %v2167_v22, %v2166_v15  ;;  %v1946_v19 = vmax.f32 %v1944_v39, %v1945_v37  ;;  %v4515_v63 = vmax.f32 %v4344_v47, %v1888_v5  ;;  %v2798_v5 = vld [vmem:[%s4862_s7 + $0x60] sm:$0xff] }
 0x20f   : > { %v2553_v42 = vcombine.low %v2485_v27, %v2486_v43  ;;  %3451 = vpow2.f32 %v2028_v36  ;;  %v3317_v23 = vpack.c.bf16 %v2795_v8, %v2794_v3  ;;  %v2567_v16 = vrot.slane %v2487_v51, %v4965_v40  ;;  %v2799_v36 = vld [vmem:[%s4862_s7 + $0x68] sm:$0xff]  ;;  %v4967_v27 = vld [vmem:[#allocation19_spill] sm:$0xff] }
 0x210   : > { %v4517_v52 = vpop.eup %3443  ;;  %v2545_v24 = vcombine.low %v2537_v61, %v2544_v56  ;;  %v2134_v39 = vadd.f32 %v2111_v49, %v2063_v38  ;;  %v2169_v33 = vrot.slane %v2168_v1, 2  ;;  %v1948_v59 = vrot.slane %v1947_v46, 4  ;;  %v4969_v61 = vld [vmem:[#allocation20_spill] sm:$0xff] }
 0x211   : > { %v4520_v48 = vpop.eup %3445  ;;  %v2560_v37 = vrot.slane %v2553_v42, %v4965_v40  ;;  %v2228_v14 = vmul.f32 %v4517_v52, %v4431_v21  ;;  %3318 = vmatpush3.bf16.msra.mxu0 %v3317_v23  ;;  %v3320_v47 = vpack.c.bf16 %v2797_v32, %v2796_v25  ;;  %v4966_v17 = vmax.f32 %v4275_v4, %v4316_v12  ;;  %v4970_v23 = vld [vmem:[#allocation37_spill] sm:$0xff] }
 0x212   : > { %v2552_v29 = vrot.slane %v2545_v24, %v4965_v40  ;;  %v2170_v54 = vadd.f32 %v2169_v33, %v2168_v1  ;;  %v2064_v41 = vrot.slane %v4520_v48, 4  ;;  %3319 = vmatprep.subr.bf16.mxu0 %v4957_v26  ;;  %v3323_v3 = vpack.c.bf16 %v2799_v36, %v2798_v5 }
 0x213   : > { %v4536_v21 = vmax.f32 %v4966_v17, %v1946_v19  ;;  %v4539_v15 = vpop.eup %3447  ;;  %v2568_v28 = vcombine.low %v2560_v37, %v2567_v16  ;;  %v2389_v11 = vrot.slane %v2228_v14, %v3766_v13  ;;  %v2393_v34 = vrot.slane %v2228_v14, %v4279_v9  ;;  %v4972_v17 = vld [vmem:[#allocation23_spill] sm:$0xff] }
 0x214   : > { %v2397_v0 = vrot.slane %v2228_v14, %v4282_v50  ;;  %v2171_v38 = vrot.slane %v2170_v54, 1  ;;  %v2065_v49 = vadd.f32 %v4520_v48, %v2064_v41  ;;  %v2112_v22 = vrot.slane %v4539_v15, 4 }
 0x215   : > { %v4546_v4 = vpop.eup %3449  ;;  %v4549_v12 = vsel %vm1769_vm6, %v2552_v29, 0.0  ;;  %v2575_v8 = vrot.slane %v2568_v28, %v4965_v40  ;;  %v2488_v43 = vmul.f32 %v2389_v11, %v4967_v27  ;;  %v2489_v51 = vmul.f32 %v2393_v34, %v4968_v60  ;;  %3321 = vmatpush3.bf16.msra.mxu0 %v3320_v47 }
 0x216   : > { %v2490_v56 = vmul.f32 %v2397_v0, %v4969_v61  ;;  %v2229_v1 = vmul.f32 %v4546_v4, %v4442_v10  ;;  %v2172_v19 = vadd.f32 %v2171_v38, %v2170_v54  ;;  %v2066_v25 = vrot.slane %v2065_v49, 2  ;;  %3322 = vmatprep.subr.bf16.mxu0 %v4957_v26  ;;  %v4973_v0 = vld [vmem:[#allocation26_spill] sm:$0xff] }
 0x217   : > { %v2576_v32 = vcombine.low %v2488_v43, %v2489_v51  ;;  %v2113_v42 = vadd.f32 %v4539_v15, %v2112_v22  ;;  %v1968_v24 = vsub.f32 %v4970_v23, %v4536_v21  ;;  %v1949_v16 = vmax.f32 %v1947_v46, %v1948_v59  ;;  %v4971_v46 = vld [vmem:[#allocation22_spill] sm:$0xff] }
 0x218   : > { %v2723_v33 = vrot.slane %v4549_v12, 4  ;;  %v2590_v37 = vrot.slane %v2490_v56, %v4965_v40  ;;  %v2401_v14 = vrot.slane %v2229_v1, %v3766_v13  ;;  %v2405_v47 = vrot.slane %v2229_v1, %v4279_v9 }
 0x219   : > { %v4565_v10 = vpop.eup %3451  ;;  %v2583_v5 = vrot.slane %v2576_v32, %v4965_v40  ;;  %v2409_v36 = vrot.slane %v2229_v1, %v4282_v50  ;;  %v2198_v29 = vadd.f32 %v2172_v19, %v2134_v39  ;;  %v2067_v54 = vadd.f32 %v2066_v25, %v2065_v49  ;;  %3324 = vmatpush3.bf16.msra.mxu0 %v3323_v3  ;;  %v4974_v1 = vld [vmem:[#allocation39_spill] sm:$0xff]  ;;  %v2800_v25 = vld [vmem:[%s4862_s7 + $0x70] sm:$0xff]  ;;  %v2801_v32 = vld [vmem:[%s4862_s7 + $0x78] sm:$0xff] }
 0x21a   : > { %v2729_v41 = vsel %vm1769_vm6, %v2575_v8, 0.0  ;;  %v2491_v59 = vmul.f32 %v2401_v14, %v4971_v46  ;;  %v2492_v28 = vmul.f32 %v2405_v47, %v4972_v17  ;;  %v2114_v11 = vrot.slane %v2113_v42, 2  ;;  %3325 = vmatprep.subr.bf16.mxu0 %v4957_v26 }
 0x21b   : > { %v2591_v34 = vcombine.low %v2583_v5, %v2590_v37  ;;  %v2493_v38 = vmul.f32 %v2409_v36, %v4973_v0  ;;  %3453 = vrcp.f32 %v2198_v29  ;;  %v2068_v22 = vrot.slane %v2067_v54, 1 }
 0x21c   : > { %v2599_v27 = vcombine.low %v2491_v59, %v2492_v28  ;;  %v2115_v43 = vadd.f32 %v2114_v11, %v2113_v42  ;;  %v2173_v39 = vsel %vm1769_vm6, %v4565_v10, 0.0  ;;  %v1982_v49 = vmul.f32 1.442695, %v1968_v24 }
 0x21d   : > { %v2730_v3 = vrot.slane %v2729_v41, 4  ;;  %v2598_v8 = vrot.slane %v2591_v34, %v4965_v40  ;;  %v2613_v60 = vrot.slane %v2493_v38, %v4965_v40  ;;  %v2174_v51 = vrot.slane %v2173_v39, 4 }
 0x21e   : > { %v2606_v61 = vrot.slane %v2599_v27, %v4965_v40  ;;  %v2116_v56 = vrot.slane %v2115_v43, 1  ;;  %3455 = vpow2.f32 %v1982_v49  ;;  %v1992_v19 = vsub.f32 %v4974_v1, %v4536_v21 }
 0x21f   : > { %v2069_v42 = vadd.f32 %v2068_v22, %v2067_v54  ;;  %v2175_v23 = vadd.f32 %v2174_v51, %v2173_v39  ;;  %v2016_v24 = vsub.f32 %v4360_v45, %v4536_v21  ;;  %v1950_v37 = vrot.slane %v1949_v16, 2  ;;  %v3473_v39 = vld [vmem:[%s3763_s30] sm:$0xff] }
 0x220   : > { %v4590_v14 = vsel %vm1769_vm6, %v2598_v8, 0.0  ;;  %v4592_v47 = vcombine.low %v2606_v61, %v2613_v60  ;;  %v2117_v5 = vadd.f32 %v2116_v56, %v2115_v43  ;;  %v2006_v36 = vmul.f32 1.442695, %v1992_v19  ;;  %v3475_v61 = vld [vmem:[%s3763_s30 + $0x10] sm:$0xff] }
 0x221   : > { %v2176_v29 = vrot.slane %v2175_v23, 2  ;;  %v2030_v46 = vmul.f32 1.442695, %v2016_v24  ;;  %v1951_v59 = vmax.f32 %v1949_v16, %v1950_v37  ;;  %v3326_v17 = vpack.c.bf16 %v2801_v32, %v2800_v25  ;;  %v4976_v25 = vld [vmem:[#allocation21_spill] sm:$0xff]  ;;  %v4978_v24 = vld [vmem:[#allocation34_spill] sm:$0xff] }
 0x222   : > { %3457 = vpow2.f32 %v2006_v36  ;;  %v1897_v54 = vmax.f32 %v4314_v31, %v4515_v63  ;;  %v2203_v28 = vmul.f32 %v4470_v44, %v4391_v18  ;;  %v2205_v11 = vmul.f32 %v4476_v2, %v4409_v7 }
 0x223   : > { %v2177_v45 = vadd.f32 %v2176_v29, %v2175_v23  ;;  %3459 = vpow2.f32 %v2030_v46  ;;  %v1952_v21 = vrot.slane %v1951_v59, 1  ;;  %3327 = vmatpush3.bf16.msra.mxu0 %v3326_v17  ;;  %v4601_v34 = vadd.f32 %v2723_v33, %v4549_v12 }
 0x224   : > { %v4603_v16 = vadd.f32 %v2730_v3, %v2729_v41  ;;  %v2737_v0 = vrot.slane %v4590_v14, 4  ;;  %v2207_v31 = vmul.f32 %v4517_v52, %v4425_v35  ;;  %v2621_v63 = vrot.slane %v4592_v47, %v4965_v40  ;;  %v3474_v3 = vld [vmem:[%s3763_s30 + $0x8] sm:$0xff] }
 0x225   : > { %v4608_v18 = vpop.eup %3453  ;;  %v2135_v38 = vadd.f32 %v2117_v5, %v2069_v42  ;;  %v2178_v22 = vrot.slane %v2177_v45, 1  ;;  %v1953_v7 = vmax.f32 %v1951_v59, %v1952_v21  ;;  %v2209_v33 = vmul.f32 %v4546_v4, %v4436_v55  ;;  %v4977_v42 = vld [vmem:[#allocation24_spill] sm:$0xff] }
 0x226   : > { %v2230_v12 = vmul.f32 %v4608_v18, %v4481_v20  ;;  %v2211_v41 = vmul.f32 %v4608_v18, %v4444_v62  ;;  %v4620_v35 = vmul.f32 %v4470_v44, %v4394_v53  ;;  %v2234_v49 = vmul.f32 %v3473_v39, %v2203_v28  ;;  %v4975_v44 = vld [vmem:[#allocation38_spill] sm:$0xff] }
 0x227   : > { %v2179_v27 = vadd.f32 %v2178_v22, %v2177_v45  ;;  %v1961_v43 = vmax.f32 %v1897_v54, %v1953_v7  ;;  %v2235_v8 = vmul.f32 %v3474_v3, %v2205_v11  ;;  %v2236_v62 = vmul.f32 %v3475_v61, %v2207_v31  ;;  %v3476_v28 = vld [vmem:[%s3763_s30 + $0x18] sm:$0xff]  ;;  %v3477_v22 = vld [vmem:[%s3763_s30 + $0x20] sm:$0xff] }
 0x228   : > { %v4624_v60 = vpop.eup %3455  ;;  %v2413_v20 = vrot.slane %v2230_v12, %v3766_v13  ;;  %v2417_v51 = vrot.slane %v2230_v12, %v4279_v9  ;;  %v2421_v55 = vrot.slane %v2230_v12, %v4282_v50  ;;  %v2237_v45 = vmul.f32 %v3476_v28, %v2209_v33 }
 0x229   : > { %v2199_v56 = vadd.f32 %v2179_v27, %v2135_v38  ;;  %v2070_v53 = vrot.slane %v4624_v60, 4  ;;  %v1969_v1 = vsub.f32 %v4975_v44, %v1961_v43  ;;  %v1993_v19 = vsub.f32 %v4269_v58, %v1961_v43 }
 0x22a   : > { %v2494_v32 = vmul.f32 %v2413_v20, %v4976_v25  ;;  %v2495_v23 = vmul.f32 %v2417_v51, %v4977_v42  ;;  %v2496_v37 = vmul.f32 %v2421_v55, %v4978_v24  ;;  %v2017_v5 = vsub.f32 %v4490_v6, %v1961_v43  ;;  %v4979_v42 = vld [vmem:[#allocation40_spill] sm:$0xff] }
 0x22b   : > { %3461 = vrcp.f32 %v2199_v56  ;;  %v2071_v36 = vadd.f32 %v4624_v60, %v2070_v53  ;;  %v1984_v29 = vmul.f32 1.442695, %v1969_v1  ;;  %v2008_v46 = vmul.f32 1.442695, %v1993_v19 }
 0x22c   : > { %v4638_v59 = vpop.eup %3457  ;;  %v2622_v17 = vcombine.low %v2494_v32, %v2495_v23  ;;  %v2636_v54 = vrot.slane %v2496_v37, %v4965_v40  ;;  %v2032_v58 = vmul.f32 1.442695, %v2017_v5  ;;  %v2242_v6 = vrot.slane %v2234_v49, 4  ;;  %v4980_v5 = vld [vmem:[#allocation41_spill] sm:$0xff] }
 0x22d   : > { %v4642_v21 = vpop.eup %3459  ;;  %v2072_v11 = vrot.slane %v2071_v36, 2  ;;  %v2118_v31 = vrot.slane %v4638_v59, 4  ;;  %3463 = vpow2.f32 %v1984_v29  ;;  %v2238_v7 = vmul.f32 %v3477_v22, %v2211_v41 }
 0x22e   : > { %v2180_v38 = vsel %vm1769_vm6, %v4642_v21, 0.0  ;;  %3465 = vpow2.f32 %v2008_v46  ;;  %v2248_v12 = vrot.slane %v2235_v8, 4  ;;  %v2629_v33 = vrot.slane %v2622_v17, %v4965_v40 }
 0x22f   : > { %v2073_v27 = vadd.f32 %v2072_v11, %v2071_v36  ;;  %v2119_v43 = vadd.f32 %v4638_v59, %v2118_v31  ;;  %v2181_v39 = vrot.slane %v2180_v38, 4  ;;  %3467 = vpow2.f32 %v2032_v58 }
 0x230   : > { %v2243_v3 = vadd.f32 %v2242_v6, %v2234_v49  ;;  %v2249_v20 = vadd.f32 %v2248_v12, %v2235_v8  ;;  %v2254_v51 = vrot.slane %v2236_v62, 4  ;;  %v2260_v53 = vrot.slane %v2237_v45, 4 }
 0x231   : > { %v2074_v55 = vrot.slane %v2073_v27, 1  ;;  %v2120_v61 = vrot.slane %v2119_v43, 2  ;;  %v2182_v56 = vadd.f32 %v2181_v39, %v2180_v38  ;;  %v2266_v25 = vrot.slane %v2238_v7, 4 }
 0x232   : > { %v2244_v44 = vrot.slane %v2243_v3, 2  ;;  %v2250_v1 = vrot.slane %v2249_v20, 2  ;;  %v2255_v19 = vadd.f32 %v2254_v51, %v2236_v62  ;;  %v2219_v23 = vmul.f32 %v4476_v2, %v4979_v42 }
 0x233   : > { %v2121_v41 = vadd.f32 %v2120_v61, %v2119_v43  ;;  %v2183_v32 = vrot.slane %v2182_v56, 2  ;;  %v2261_v24 = vadd.f32 %v2260_v53, %v2237_v45  ;;  %v4652_v37 = vcombine.low %v2629_v33, %v2636_v54  ;;  %v4981_v43 = vld [vmem:[#allocation11_spill] sm:$0xff] }
 0x234   : > { %v4656_v49 = vmul.f32 %v4517_v52, %v4980_v5  ;;  %v4660_v8 = vmul.f32 %v4546_v4, %v4438_v30  ;;  %v4664_v62 = vmul.f32 %v4608_v18, %v4448_v57  ;;  %v2075_v29 = vadd.f32 %v2074_v55, %v2073_v27  ;;  %v4983_v33 = vld [vmem:[#allocation35_spill] sm:$0xff] }
 0x235   : > { %v3462_v36 = vpop.eup %3461  ;;  %v2122_v46 = vrot.slane %v2121_v41, 1  ;;  %v2184_v17 = vadd.f32 %v2183_v32, %v2182_v56  ;;  %v2245_v2 = vadd.f32 %v2244_v44, %v2243_v3  ;;  %v2251_v58 = vadd.f32 %v2250_v1, %v2249_v20  ;;  %v4984_v20 = vld [vmem:[#allocation27_spill] sm:$0xff]  ;;  %v3478_v1 = vld [vmem:[%s3763_s30 + $0x28] sm:$0xff] }
 0x236   : > { %v2231_v54 = vmul.f32 %v3462_v36, %v4565_v10  ;;  %v2256_v28 = vrot.slane %v2255_v19, 2  ;;  %v2267_v45 = vadd.f32 %v2266_v25, %v2238_v7  ;;  %v2213_v30 = vmul.f32 %v3462_v36, %v4520_v48 }
 0x237   : > { %v4667_v52 = vpop.eup %3463  ;;  %v2123_v11 = vadd.f32 %v2122_v46, %v2121_v41  ;;  %v2185_v31 = vrot.slane %v2184_v17, 1  ;;  %v2262_v4 = vrot.slane %v2261_v24, 2  ;;  %v4982_v48 = vmax.f32 %v4981_v43, 0.0  ;;  %v4985_v41 = vld [vmem:[#allocation29_spill] sm:$0xff] }
 0x238   : > { %v4670_v6 = vpop.eup %3465  ;;  %v2425_v57 = vrot.slane %v2231_v54, %v3766_v13  ;;  %v2429_v18 = vrot.slane %v2231_v54, %v4279_v9  ;;  %v2433_v38 = vrot.slane %v2231_v54, %v4282_v50  ;;  %v2076_v10 = vrot.slane %v4667_v52, 4 }
 0x239   : > { %v4676_v22 = vpop.eup %3467  ;;  %v2136_v7 = vadd.f32 %v2123_v11, %v2075_v29  ;;  %v2186_v12 = vadd.f32 %v2185_v31, %v2184_v17  ;;  %v2124_v27 = vrot.slane %v4670_v6, 4  ;;  %v2290_v39 = vmul.f32 %v4620_v35, %v4982_v48 }
 0x23a   : > { %v2497_v3 = vmul.f32 %v2425_v57, %v4983_v33  ;;  %v2498_v51 = vmul.f32 %v2429_v18, %v4984_v20  ;;  %v2077_v55 = vadd.f32 %v4667_v52, %v2076_v10  ;;  %v2246_v61 = vrot.slane %v2245_v2, 1  ;;  %v4986_v33 = vld [vmem:[#allocation10_spill] sm:$0xff] }
 0x23b   : > { %v2200_v56 = vadd.f32 %v2186_v12, %v2136_v7  ;;  %v2125_v53 = vadd.f32 %v4670_v6, %v2124_v27  ;;  %v2187_v44 = vsel %vm1769_vm6, %v4676_v22, 0.0  ;;  %v2239_v25 = vmul.f32 %v3478_v1, %v2213_v30 }
 0x23c   : > { %v2499_v32 = vmul.f32 %v2433_v38, %v4985_v41  ;;  %v2078_v42 = vrot.slane %v2077_v55, 2  ;;  %v2188_v5 = vrot.slane %v2187_v44, 4  ;;  %v2257_v35 = vadd.f32 %v2256_v28, %v2255_v19 }
 0x23d   : > { %v2645_v29 = vcombine.low %v2497_v3, %v2498_v51  ;;  %3469 = vrcp.f32 %v2200_v56  ;;  %v2126_v46 = vrot.slane %v2125_v53, 2  ;;  %v2223_v17 = vmul.f32 %v3462_v36, %v4539_v15 }
 0x23e   : > { %v2079_v54 = vadd.f32 %v2078_v42, %v2077_v55  ;;  %v2189_v11 = vadd.f32 %v2188_v5, %v2187_v44  ;;  %v2252_v31 = vrot.slane %v2251_v58, 1  ;;  %v2263_v57 = vadd.f32 %v2262_v4, %v2261_v24 }
 0x23f   : > { %v2127_v18 = vadd.f32 %v2126_v46, %v2125_v53  ;;  %v4691_v10 = vadd.f32 %v2246_v61, %v2245_v2  ;;  %v2268_v7 = vrot.slane %v2267_v45, 2  ;;  %v2272_v12 = vrot.slane %v2239_v25, 4  ;;  %v4988_v2 = vld [vmem:[#allocation13_spill] sm:$0xff]  ;;  %v4990_v53 = vld [vmem:[#allocation12_spill] sm:$0xff] }
 0x240   : > { %v2659_v30 = vrot.slane %v2499_v32, %v4965_v40  ;;  %v2080_v38 = vrot.slane %v2079_v54, 1  ;;  %v2190_v27 = vrot.slane %v2189_v11, 2  ;;  %v2258_v43 = vrot.slane %v2257_v35, 1 }
 0x241   : > { %v2652_v19 = vrot.slane %v2645_v29, %v4965_v40  ;;  %v2128_v28 = vrot.slane %v2127_v18, 1  ;;  %v2264_v48 = vrot.slane %v2263_v57, 1  ;;  %v4987_v15 = vmax.f32 %v4986_v33, 0.0 }
 0x242   : > { %v2081_v3 = vadd.f32 %v2080_v38, %v2079_v54  ;;  %v2191_v20 = vadd.f32 %v2190_v27, %v2189_v11  ;;  %v4697_v24 = vadd.f32 %v2268_v7, %v2267_v45  ;;  %v4989_v4 = vmax.f32 %v4988_v2, 0.0 }
 0x243   : > { %v2291_v36 = vmul.f32 %v2219_v23, %v4987_v15  ;;  %v2129_v55 = vadd.f32 %v2128_v28, %v2127_v18  ;;  %v4702_v61 = vadd.f32 %v2252_v31, %v2251_v58  ;;  %v2273_v56 = vadd.f32 %v2272_v12, %v2239_v25  ;;  %v4992_v23 = vld [vmem:[#allocation14_spill] sm:$0xff] }
 0x244   : > { %v2292_v51 = vmul.f32 %v4656_v49, %v4989_v4  ;;  %v4991_v44 = vmax.f32 %v4990_v53, 0.0  ;;  %v2192_v41 = vrot.slane %v2191_v20, 1  ;;  %v4707_v32 = vadd.f32 %v2258_v43, %v2257_v35  ;;  %v4994_v35 = vld [vmem:[#allocation15_spill] sm:$0xff]  ;;  %v4996_v4 = vld [vmem:[#allocation30_spill] sm:$0xff] }
 0x245   : > { %v4993_v42 = vmax.f32 %v4992_v23, 0.0  ;;  %v2298_v5 = vrot.slane %v2290_v39, 4  ;;  %v4712_v29 = vcombine.low %v2652_v19, %v2659_v30  ;;  %v2137_v46 = vadd.f32 %v2129_v55, %v2081_v3  ;;  %v4997_v55 = vld [vmem:[#allocation33_spill] sm:$0xff] }
 0x246   : > { %v2293_v1 = vmul.f32 %v4660_v8, %v4991_v44  ;;  %v4714_v49 = vadd.f32 %v2264_v48, %v2263_v57  ;;  %v2304_v58 = vrot.slane %v2291_v36, 4  ;;  %v2193_v54 = vadd.f32 %v2192_v41, %v2191_v20 }
 0x247   : > { %v2294_v45 = vmul.f32 %v4664_v62, %v4993_v42  ;;  %v2270_v25 = vrot.slane %v4697_v24, 1  ;;  %v2299_v11 = vadd.f32 %v2298_v5, %v2290_v39  ;;  %v2310_v31 = vrot.slane %v2292_v51, 4  ;;  %v3470_v8 = vpop.eup %3469 }
 0x248   : > { %v2274_v18 = vrot.slane %v2273_v56, 2  ;;  %v4995_v7 = vmax.f32 %v4994_v35, 0.0  ;;  %v2305_v38 = vadd.f32 %v2304_v58, %v2291_v36  ;;  %v2316_v62 = vrot.slane %v2293_v1, 4  ;;  %v5000_v58 = vld [vmem:[#allocation28_spill] sm:$0xff] }
 0x249   : > { %v2232_v30 = vmul.f32 %v3470_v8, %v4642_v21  ;;  %v2201_v27 = vadd.f32 %v2193_v54, %v2137_v46  ;;  %v2215_v57 = vmul.f32 %v3470_v8, %v4624_v60  ;;  %v2322_v43 = vrot.slane %v2294_v45, 4 }
 0x24a   : > { %v2295_v12 = vmul.f32 %v2223_v17, %v4995_v7  ;;  %v2224_v19 = vmul.f32 %v3470_v8, %v4638_v59  ;;  %v2300_v28 = vrot.slane %v2299_v11, 2  ;;  %v2306_v48 = vrot.slane %v2305_v38, 2  ;;  %v3479_v17 = vld [vmem:[%s3763_s30 + $0x30] sm:$0xff] }
 0x24b   : > { %v2311_v39 = vadd.f32 %v2310_v31, %v2292_v51  ;;  %v2437_v33 = vrot.slane %v2232_v30, %v3766_v13  ;;  %v2441_v15 = vrot.slane %v2232_v30, %v4279_v9  ;;  %v2445_v3 = vrot.slane %v2232_v30, %v4282_v50  ;;  %v4998_v51 = vld [vmem:[#allocation16_spill] sm:$0xff] }
 0x24c   : > { %3471 = vrcp.f32 %v2201_v27  ;;  %v2240_v36 = vmul.f32 %v3479_v17, %v2215_v57  ;;  %v2275_v20 = vadd.f32 %v2274_v18, %v2273_v56  ;;  %v2301_v21 = vadd.f32 %v2300_v28, %v2299_v11 }
 0x24d   : > { %v2307_v2 = vadd.f32 %v2306_v48, %v2305_v38  ;;  %v2500_v60 = vmul.f32 %v2437_v33, %v4996_v4  ;;  %v2501_v53 = vmul.f32 %v2441_v15, %v4997_v55  ;;  %v2312_v59 = vrot.slane %v2311_v39, 2 }
 0x24e   : > { %v2328_v44 = vrot.slane %v2295_v12, 4  ;;  %v2278_v41 = vrot.slane %v2240_v36, 4  ;;  %v4999_v23 = vmax.f32 %v4998_v51, 0.0  ;;  %v2302_v5 = vrot.slane %v2301_v21, 1 }
 0x24f   : > { %v2317_v46 = vadd.f32 %v2316_v62, %v2293_v1  ;;  %v2502_v54 = vmul.f32 %v2445_v3, %v5000_v58  ;;  %v2668_v31 = vcombine.low %v2500_v60, %v2501_v53  ;;  %v2313_v8 = vadd.f32 %v2312_v59, %v2311_v39 }
 0x250   : > { %v2296_v42 = vmul.f32 %v2224_v19, %v4999_v23  ;;  %v2323_v35 = vadd.f32 %v2322_v43, %v2294_v45  ;;  %v2276_v56 = vrot.slane %v2275_v20, 1  ;;  %v2279_v11 = vadd.f32 %v2278_v41, %v2240_v36 }
 0x251   : > { %v2308_v18 = vrot.slane %v2307_v2, 1  ;;  %v2318_v7 = vrot.slane %v2317_v46, 2  ;;  %v2675_v38 = vrot.slane %v2668_v31, %v4965_v40  ;;  %v2303_v30 = vadd.f32 %v2302_v5, %v2301_v21  ;;  %v5001_v5 = vld [vmem:[#allocation17_spill] sm:$0xff] }
 0x252   : > { %v2324_v27 = vrot.slane %v2323_v35, 2  ;;  %v2329_v57 = vadd.f32 %v2328_v44, %v2295_v12  ;;  %v2280_v28 = vrot.slane %v2279_v11, 2  ;;  %v2314_v48 = vrot.slane %v2313_v8, 1 }
 0x253   : > { %v2319_v33 = vadd.f32 %v2318_v7, %v2317_v46  ;;  %v2334_v19 = vrot.slane %v2296_v42, 4  ;;  %v2682_v1 = vrot.slane %v2502_v54, %v4965_v40  ;;  %v4734_v62 = vadd.f32 %v2270_v25, %v4697_v24  ;;  %v5003_v54 = vld [vmem:[#allocation31_spill] sm:$0xff] }
 0x254   : > { %v2325_v39 = vadd.f32 %v2324_v27, %v2323_v35  ;;  %v2330_v45 = vrot.slane %v2329_v57, 2  ;;  %v4736_v43 = vadd.f32 %v2276_v56, %v2275_v20  ;;  %v2281_v15 = vadd.f32 %v2280_v28, %v2279_v11  ;;  %v5005_v56 = vld [vmem:[#allocation36_spill] sm:$0xff] }
 0x255   : > { %v2309_v3 = vadd.f32 %v2308_v18, %v2307_v2  ;;  %v2335_v17 = vadd.f32 %v2334_v19, %v2296_v42  ;;  %v4738_v21 = vcombine.low %v2675_v38, %v2682_v1  ;;  %v2320_v12 = vrot.slane %v2319_v33, 1  ;;  %v3480_v42 = vld [vmem:[%s3763_s30 + $0x38] sm:$0xff]  ;;  %s2998_s30 = scalar_lea.sflag [#allocation4], %s425_s26 }
 0x256   : > { %v3472_v36 = vpop.eup %3471  ;;  %v2331_v4 = vadd.f32 %v2330_v45, %v2329_v57  ;;  %v4741_v60 = vadd.f32 %v2303_v30, %v4691_v10  ;;  %v2315_v20 = vadd.f32 %v2314_v48, %v2313_v8  ;;  %v2282_v53 = vrot.slane %v2281_v15, 1  ;;  %v5004_v8 = vld [vmem:[#allocation32_spill] sm:$0xff] }
 0x257   : > { %v2233_v55 = vmul.f32 %v3472_v36, %v4676_v22  ;;  %v2217_v24 = vmul.f32 %v3472_v36, %v4667_v52  ;;  %v2225_v25 = vmul.f32 %v3472_v36, %v4670_v6  ;;  %v2326_v59 = vrot.slane %v2325_v39, 1 }
 0x258   : > { %v2332_v2 = vrot.slane %v2331_v4, 1  ;;  %v2336_v44 = vrot.slane %v2335_v17, 2  ;;  %v5002_v46 = vmax.f32 %v5001_v5, 0.0  ;;  %v2321_v58 = vadd.f32 %v2320_v12, %v2319_v33 }
 0x259   : > { %v2449_v41 = vrot.slane %v2233_v55, %v3766_v13  ;;  %v2453_v51 = vrot.slane %v2233_v55, %v4279_v9  ;;  %v2457_v23 = vrot.slane %v2233_v55, %v4282_v50  ;;  %v2241_v10 = vmul.f32 %v3480_v42, %v2217_v24 }
 0x25a   : > { %v2297_v22 = vmul.f32 %v2225_v25, %v5002_v46  ;;  %v2337_v52 = vadd.f32 %v2336_v44, %v2335_v17  ;;  %v2347_v6 = vadd.f32 %v2309_v3, %v4702_v61  ;;  %v2327_v18 = vadd.f32 %v2326_v59, %v2325_v39 }
 0x25b   : > { %v2503_v31 = vmul.f32 %v2449_v41, %v5003_v54  ;;  %v2504_v35 = vmul.f32 %v2453_v51, %v5004_v8  ;;  %v2505_v11 = vmul.f32 %v2457_v23, %v5005_v56  ;;  %v2284_v13 = vrot.slane %v2241_v10, 4 }
 0x25c   : > { %v2340_v9 = vrot.slane %v2297_v22, 4  ;;  %v2348_v50 = vadd.f32 %v2315_v20, %v4707_v32  ;;  %v2644_v7 = vrot.slane %v4652_v37, %v4965_v40  ;;  %v4759_v30 = vadd.f32 %v2282_v53, %v2281_v15 }
 0x25d   : > { %v2691_v38 = vcombine.low %v2503_v31, %v2504_v35  ;;  %v2285_v27 = vadd.f32 %v2284_v13, %v2241_v10  ;;  %v4761_v57 = vadd.f32 %v2332_v2, %v2331_v4  ;;  %v2705_v61 = vrot.slane %v2505_v11, %v4965_v40 }
 0x25e   : > { %v2338_v28 = vrot.slane %v2337_v52, 1  ;;  %v2341_v48 = vadd.f32 %v2340_v9, %v2297_v22  ;;  %v4765_v33 = vadd.f32 %v2321_v58, %v4714_v49  ;;  %v2725_v32 = vrot.slane %v4601_v34, 2 }
 0x25f   : > { %v2698_v19 = vrot.slane %v2691_v38, %v4965_v40  ;;  %v2286_v1 = vrot.slane %v2285_v27, 2  ;;  %v2732_v37 = vrot.slane %v4603_v16, 2  ;;  %v2667_v45 = vrot.slane %v4712_v29, %v4965_v40 }
 0x260   : > { %v2342_v39 = vrot.slane %v2341_v48, 2  ;;  %v2738_v15 = vadd.f32 %v2737_v0, %v4590_v14  ;;  %v2743_v49 = vsel %vm1769_vm6, %v2621_v63, 0.0  ;;  %v2690_v3 = vrot.slane %v4738_v21, %v4965_v40 }
 0x261   : > { %v2706_v17 = vcombine.low %v2698_v19, %v2705_v61  ;;  %v2726_v36 = vadd.f32 %v2725_v32, %v4601_v34  ;;  %v2733_v12 = vadd.f32 %v2732_v37, %v4603_v16  ;;  %v2287_v4 = vadd.f32 %v2286_v1, %v2285_v27  ;;  %v2903_v19 = vld [vmem:[#allocation2] sm:$0xff]  ;;  %v2904_v1 = vld [vmem:[#allocation2 + $0x8] sm:$0xff] }
 0x262   : > { %v2739_v55 = vrot.slane %v2738_v15, 2  ;;  %v2744_v29 = vrot.slane %v2743_v49, 4  ;;  %v2750_v24 = vsel %vm1769_vm6, %v2644_v7, 0.0  ;;  %v2343_v25 = vadd.f32 %v2342_v39, %v2341_v48 }
 0x263   : > { %v2713_v14 = vrot.slane %v2706_v17, %v4965_v40  ;;  %v2727_v0 = vrot.slane %v2726_v36, 1  ;;  %v2734_v47 = vrot.slane %v2733_v12, 1  ;;  %v2350_v63 = vadd.f32 %v2327_v18, %v4734_v62 }
 0x264   : > { %v2740_v20 = vadd.f32 %v2739_v55, %v2738_v15  ;;  %v2745_v53 = vadd.f32 %v2744_v29, %v2743_v49  ;;  %v2751_v21 = vrot.slane %v2750_v24, 4  ;;  %v2339_v59 = vadd.f32 %v2338_v28, %v2337_v52  ;;  %v2905_v49 = vld [vmem:[#allocation2 + $0x10] sm:$0xff] }
 0x265   : > { %v2728_v2 = vadd.f32 %v2727_v0, %v2726_v36  ;;  %v2735_v34 = vadd.f32 %v2734_v47, %v2733_v12  ;;  %v2757_v16 = vsel %vm1769_vm6, %v2667_v45, 0.0  ;;  %v2288_v44 = vrot.slane %v2287_v4, 1 }
 0x266   : > { %v2741_v41 = vrot.slane %v2740_v20, 1  ;;  %v2746_v51 = vrot.slane %v2745_v53, 2  ;;  %v2752_v23 = vadd.f32 %v2751_v21, %v2750_v24  ;;  %v2344_v42 = vrot.slane %v2343_v25, 1  ;;  %v2908_v21 = vld [vmem:[#allocation2 + $0x28] sm:$0xff] }
 0x267   : > { %v2758_v10 = vrot.slane %v2757_v16, 4  ;;  %v2764_v40 = vsel %vm1769_vm6, %v2690_v3, 0.0  ;;  %v2771_v5 = vsel %vm1769_vm6, %v2713_v14, 0.0  ;;  %v2778_v58 = vadd.f32 %v2728_v2, %v4741_v60  ;;  %v2906_v3 = vld [vmem:[#allocation2 + $0x18] sm:$0xff] }
 0x268   : > { %v2742_v46 = vadd.f32 %v2741_v41, %v2740_v20  ;;  %v2747_v62 = vadd.f32 %v2746_v51, %v2745_v53  ;;  %v2753_v22 = vrot.slane %v2752_v23, 2  ;;  %v2765_v54 = vrot.slane %v2764_v40, 4  ;;  %v2911_v51 = vld [vmem:[#allocation2 + $0x40] sm:$0xff] }
 0x269   : > { %v2759_v52 = vadd.f32 %v2758_v10, %v2757_v16  ;;  %v2772_v31 = vrot.slane %v2771_v5, 4  ;;  %v2779_v8 = vadd.f32 %v2735_v34, %v2347_v6  ;;  %v2289_v32 = vadd.f32 %v2288_v44, %v2287_v4  ;;  %v2910_v16 = vld [vmem:[#allocation2 + $0x38] sm:$0xff]  ;;  %v2913_v10 = vld [vmem:[#allocation2 + $0x50] sm:$0xff] }
 0x26a   : > { %v2748_v35 = vrot.slane %v2747_v62, 1  ;;  %v2754_v56 = vadd.f32 %v2753_v22, %v2752_v23  ;;  %v2780_v11 = vadd.f32 %v2742_v46, %v2348_v50  ;;  %v2766_v18 = vadd.f32 %v2765_v54, %v2764_v40  ;;  %v2912_v23 = vld [vmem:[#allocation2 + $0x48] sm:$0xff]  ;;  %v2914_v40 = vld [vmem:[#allocation2 + $0x58] sm:$0xff]  ;;  %v2915_v46 = vld [vmem:[#allocation2 + $0x60] sm:$0xff] }
 0x26b   : > { %v2760_v13 = vrot.slane %v2759_v52, 2  ;;  %v2773_v9 = vadd.f32 %v2772_v31, %v2771_v5  ;;  %v2818_v7 = vsel %vm2817_vm7, %v2779_v8, %v2778_v58  ;;  %v2345_v6 = vadd.f32 %v2344_v42, %v2343_v25  ;;  %v2917_v58 = vld [vmem:[#allocation2 + $0x70] sm:$0xff]  ;;  %v3141_v31 = vld [vmem:[%s4863_s8] ss:$0 sm:$0xff] }
 0x26c   : > { %v2749_v38 = vadd.f32 %v2748_v35, %v2747_v62  ;;  %v2755_v27 = vrot.slane %v2754_v56, 1  ;;  %v2767_v28 = vrot.slane %v2766_v18, 2  ;;  %v2820_v60 = vsel %vm2819_vm8, %v2780_v11, %v2818_v7  ;;  %v2916_v62 = vld [vmem:[#allocation2 + $0x68] sm:$0xff] }
 0x26d   : > { %v2761_v61 = vadd.f32 %v2760_v13, %v2759_v52  ;;  %v2774_v48 = vrot.slane %v2773_v9, 2  ;;  %v3329_v12 = vpack.c.bf16 %v2904_v1, %v2903_v19  ;;  %v2351_v55 = vadd.f32 %v4761_v57, %v4736_v43  ;;  %v2918_v52 = vld [vmem:[#allocation2 + $0x78] sm:$0xff] }
 0x26e   : > { %v2756_v37 = vadd.f32 %v2755_v27, %v2754_v56  ;;  %v2781_v50 = vadd.f32 %v2749_v38, %v4765_v33  ;;  %v2768_v45 = vadd.f32 %v2767_v28, %v2766_v18  ;;  %v2352_v25 = vadd.f32 %v2339_v59, %v4759_v30  ;;  %v2909_v59 = vld [vmem:[#allocation2 + $0x30] sm:$0xff] }
 0x26f   : > { %v2762_v39 = vrot.slane %v2761_v61, 1  ;;  %v2775_v15 = vadd.f32 %v2774_v48, %v2773_v9  ;;  %3330 = vmatpush3.bf16.msra.mxu1 %v3329_v12  ;;  %v3332_v33 = vpack.c.bf16 %v2906_v3, %v2905_v49  ;;  %v2353_v0 = vadd.f32 %v2345_v6, %v2289_v32 }
 0x270   : > { %v2782_v17 = vadd.f32 %v2756_v37, %v2350_v63  ;;  %v2822_v36 = vsel %vm2821_vm9, %v2781_v50, %v2820_v60  ;;  %v2769_v24 = vrot.slane %v2768_v45, 1  ;;  %3331 = vmatprep.subr.bf16.mxu1 %v4957_v26  ;;  %v2907_v63 = vld [vmem:[#allocation2 + $0x20] sm:$0xff]  ;;  %v3338_v41 = vpack.c.bf16 %v2910_v16, %v2909_v59 }
 0x271   : > { %v2763_v29 = vadd.f32 %v2762_v39, %v2761_v61  ;;  %v2776_v4 = vrot.slane %v2775_v15, 1  ;;  %v3335_v34 = vpack.c.bf16 %v2908_v21, %v2907_v63  ;;  %v3341_v42 = vpack.c.bf16 %v2912_v23, %v2911_v51 }
 0x272   : > { %v2824_v14 = vsel %vm2823_vm10, %v2782_v17, %v2822_v36  ;;  %v2770_v47 = vadd.f32 %v2769_v24, %v2768_v45  ;;  %v3344_v5 = vpack.c.bf16 %v2914_v40, %v2913_v10  ;;  %v3347_v22 = vpack.c.bf16 %v2916_v62, %v2915_v46 }
 0x273   : > { %v2777_v20 = vadd.f32 %v2776_v4, %v2775_v15  ;;  %v2783_v53 = vadd.f32 %v2763_v29, %v2351_v55  ;;  %3333 = vmatpush3.bf16.msra.mxu1 %v3332_v33  ;;  %v3350_v54 = vpack.c.bf16 %v2918_v52, %v2917_v58 }
 0x274   : > { %v2784_v2 = vadd.f32 %v2770_v47, %v2352_v25  ;;  %3334 = vmatprep.subr.bf16.mxu1 %v4957_v26 }
 0x275   : > { %v2785_v43 = vadd.f32 %v2777_v20, %v2353_v0  ;;  %v2826_v57 = vsel %vm2825_vm11, %v2783_v53, %v2824_v14 }
 0x276   : > { %v2828_v30 = vsel %vm2827_vm12, %v2784_v2, %v2826_v57 }
 0x277   : > { %v2830_v44 = vsel %vm2829_vm13, %v2785_v43, %v2828_v30  ;;  %3336 = vmatpush3.bf16.msra.mxu1 %v3335_v34 }
 0x278   : > { %3258 = vmatmul.mubr.f32.vlgmr.msra.gmra.mrb[8].mxu0 %v2830_v44  ;;  %3337 = vmatprep.subr.bf16.mxu1 %v4957_v26 }
 0x27b   : > { %3339 = vmatpush3.bf16.msra.mxu1 %v3338_v41 }
 0x27c   : > { %3340 = vmatprep.subr.bf16.mxu1 %v4957_v26 }
 0x27f   : > { %3342 = vmatpush3.bf16.msra.mxu1 %v3341_v42 }
 0x280   : > { %3343 = vmatprep.subr.bf16.mxu1 %v4957_v26 }
 0x283   : > { %3345 = vmatpush3.bf16.msra.mxu1 %v3344_v5 }
 0x284   : > { %3346 = vmatprep.subr.bf16.mxu1 %v4957_v26 }
 0x287   : > { %3348 = vmatpush3.bf16.msra.mxu1 %v3347_v22 }
 0x288   : > { %3349 = vmatprep.subr.bf16.mxu1 %v4957_v26  ;;  %v3142_v26 = vld [vmem:[%s4865_s10] ss:$0 sm:$0xff] }
 0x28b   : > { %3351 = vmatpush3.bf16.msra.mxu1 %v3350_v54 }
 0x34b   : > { %v2898_v8 = vpop.f32.mrb[8].mxu0 }
 0x34c   : > { %v2899_v35 = vadd.f32 %v3141_v31, %v2898_v8  ;;  %v3259_v56 = vpop.f32.mrb[9].mxu0 }
 0x34e   : > { %v2902_v11 = vmax.f32 %v2899_v35, 0.0 }
 0x350   : > { %3293 = vmatmul.mubr.f32.vlgmr.msra.gmra.mrb[6].mxu1 %v2902_v11 }
 0x423   : > { %v2992_v13 = vpop.f32.mrb[6].mxu1 }
 0x424   : > { %v2993_v18 = vadd.f32 %v3142_v26, %v2992_v13  ;;  %v3294_v9 = vpop.f32.mrb[7].mxu1 }
 0x426   : > { %2996 = vst [vmem:[%s427_s15] sm:$0xff] %v2993_v18 }
 0x427   : > { %3522 = shalt.err (!%p3519_p7)
}
 0x428   : > { %s3523_s26 = scalar_lea.hbm %s4813_s25, 128  ;;  %s3527_s15 = scalar_lea.hbm %s4866_s11, 256 }
 0x429   : > { %p3524_p8 = scmp.ne.s32.totalorder %s4813_s25, %s3523_s26  ;;  %p3528_p1 = scmp.lt.u32.totalorder %s4813_s25, %s4866_s11 }
 0x42a   : > { %p3529_p0 = scmp.lt.u32.totalorder %s3527_s15, %s3523_s26  ;;  %p3531_p6 = scmp.lt.u32.totalorder %s3523_s26, %s4813_s25 }
 0x42b   : > { %p3525_p11 = pnand %p3524_p8, %p5006_p9 }
 0x42c   : > { %p3530_p5 = por %p3529_p0, %p3528_p1 }
 0x42d   : > { %p3526_p13 = pneg %p3525_p11 }
 0x42e   : > { %p3532_p10 = por %p3531_p6, %p3530_p5 }
 0x430   : > { %p3533_p12 = pnand %p3532_p10, %p3526_p13 }
 0x432   : > { %3536 = shalt.err (!%p3533_p12)
}
 0x433   : > { %3356 = dma.vmem_to_hbm [thread:$0]  (%p5006_p9), %s4815_s22, 128, %s4813_s25, %s2998_s30  }
 0x434 PF: > { %p3368_p2 = scmp.ge.s32.totalorder %s3575_s20, 2  ;;  %s3023_s24 = sand.u32 1, %s3563_s17  }
 0x435   : > { %p5007_p3 = scmp.ne.s32.totalorder %s4917_s28, 0  ;;  %s3024_s21 = scalar_lea.sflag [#allocation4], %s3023_s24 }
 0x437   : > { %p3363_p4 = pnand %p3368_p2, %p5007_p3 }
 0x439   : > { %3558 = dma.done.wait (!%p3363_p4), %s3024_s21, 128  }
 0x43a   : > { %3560 = vsyncadd (!%p3363_p4), %s3024_s21, 4294967168  ;;  %s5008_s13 = sld [smem:[#allocation8_spill]]  ;;  %p22_p7 = scmp.ge.s32.totalorder %s3671_s23, 4  }
 0x43b   : > { %s5009_s17 = smov %s3567_s18  ;;  %s5010_s18 = smov %s3571_s19 }
 0x43c   : > { %s5012_s20 = smov %s3671_s23  ;;  %24 = sbr.rel (!%p22_p7) target bundleno = 6 (0x6), region = 110 }
 0x440   : > { %s5011_s19 = smov %s5008_s13 }
 0x443   :  { %3029 = vsyncpa [#allocation3], 1 }
 0x444   :  { %3031 = vsyncpa [#allocation3 + $0x1], 1 }
 0x445   :  { %3032 = vsyncpa [#allocation4], 1 }
 0x446   :  { %3034 = vsyncpa [#allocation4 + $0x1], 1 }

</bundles_post_ra>
